<compile_context>
chip_gen: v5e
topology: v5e:2x2
jax: 0.10.0
libtpu: 0.0.40
codegen_flags: <defaults>
</compile_context>

<pallas_src>
import functools

import jax
import jax.numpy as jnp
from jax.experimental import pallas as pl
from jax.experimental.pallas import tpu as pltpu

HIDDEN = 256
LANE = 128
SUBLANE = 8


def _round_up(x: int, m: int) -> int:
    return (x + m - 1) // m * m


def _cdiv(a: int, b: int) -> int:
    return (a + b - 1) // b


def _tensorcores_per_device() -> int:
    """Best-effort TensorCore count per JAX device.

    2 for dual-TC parts (v4, v5p, v7x), 1 for v5e / v6e.  Mis-detection only
    affects performance (whether the batch grid is split), never correctness.
    """
    try:
        kind = jax.devices()[0].device_kind.lower()
    except Exception:
        return 1
    if "lite" in kind or "v5e" in kind or "v6" in kind:
        return 1
    if "v7" in kind or "v4" in kind or "v5" in kind:
        return 2
    return 1


def prepare_params(params, *, compute_dtype=jnp.bfloat16):
    """One-time parameter preprocessing. Call once; reuse across every call.

    * weights keep the PyTorch nn.Linear (out_features, in_features) layout,
      cast to `compute_dtype` (bf16) for native MXU matmuls with f32 accum
    * biases become f32 (out, 1) columns (kernel is feature-major)
    * output layer zero-padded to a full sublane group (multiple of 8 rows)
    """
    out_features = params["w4"].shape[0]
    o_sub = max(_round_up(out_features, SUBLANE), SUBLANE)
    w4 = jnp.zeros((o_sub, HIDDEN), compute_dtype)
    w4 = w4.at[:out_features, :].set(params["w4"].astype(compute_dtype))
    b4 = jnp.zeros((o_sub, 1), jnp.float32)
    b4 = b4.at[:out_features, 0].set(params["b4"].astype(jnp.float32))
    return {
        "w1": params["w1"].astype(compute_dtype),
        "b1": params["b1"].reshape(HIDDEN, 1).astype(jnp.float32),
        "w2": params["w2"].astype(compute_dtype),
        "b2": params["b2"].reshape(HIDDEN, 1).astype(jnp.float32),
        "w3": params["w3"].astype(compute_dtype),
        "b3": params["b3"].reshape(HIDDEN, 1).astype(jnp.float32),
        "w4": w4,
        "b4": b4,
    }


def _mlp_kernel(xt_ref, w1_ref, b1_ref, w2_ref, b2_ref, w3_ref, b3_ref,
                w4_ref, b4_ref, o_ref):
    """Fused feature-major MLP: activations are (features, batch_tile).

    All matmuls use bf16 operands on the MXU with f32 accumulation; bias-add
    and ReLU stay in f32 on the VPU.  No transposes anywhere in the kernel.
    """
    cdt = w1_ref.dtype
    # Layer 1: (256, F) @ (F, TB) -> (256, TB).
    h = jnp.dot(w1_ref[...], xt_ref[...].astype(cdt),
                preferred_element_type=jnp.float32)
    h = jnp.maximum(h + b1_ref[...], 0.0)
    # Hidden layer 2: (256, 256) @ (256, TB).
    h = jnp.dot(w2_ref[...], h.astype(cdt), preferred_element_type=jnp.float32)
    h = jnp.maximum(h + b2_ref[...], 0.0)
    # Hidden layer 3.
    h = jnp.dot(w3_ref[...], h.astype(cdt), preferred_element_type=jnp.float32)
    h = jnp.maximum(h + b3_ref[...], 0.0)
    # Output layer: (o_sub, 256) @ (256, TB) -> (o_sub, TB), no activation.
    o = jnp.dot(w4_ref[...], h.astype(cdt), preferred_element_type=jnp.float32)
    o_ref[...] = (o + b4_ref[...]).astype(o_ref.dtype)


def _choose_batch_tiling(b8: int, tile_b: int, num_cores: int):
    """Pick (tile, num_tiles) for the batch (lane) axis.

    * tile is a multiple of 128 whenever num_tiles > 1 so every input/output
      block stays lane-dense; a single tile simply equals b8 (full extent).
    * num_tiles is a multiple of num_cores (balanced across TensorCores on
      dual-TC parts); single-TC parts get the fewest, largest tiles.
    * every tile starts inside the (<=7-row padded) batch.
    """
    tb_cap = max(LANE, _round_up(tile_b, LANE))
    if num_cores > 1:
        nb = num_cores * max(1, _cdiv(_cdiv(b8, num_cores), tb_cap))
    else:
        nb = _cdiv(b8, tb_cap)
    nb = max(nb, 1)
    if nb == 1:
        return b8, 1
    tb = _round_up(_cdiv(b8, nb), LANE)
    nb = _cdiv(b8, tb)
    while nb > 1 and (nb - 1) * tb >= b8:   # drop tiles fully past the end
        nb -= 1
    if nb == 1:
        return b8, 1
    return tb, nb


@functools.partial(jax.jit,
                   static_argnames=("out_features", "tile_b", "num_cores"))
def heart_mi_forward(x, prepped, *, out_features, tile_b=1024, num_cores=1):
    """Forward pass of HeartMIModel.

    x:        (B, input_size) float array
    prepped:  output of prepare_params() (built once, reused across calls)
    returns:  (B, out_features) float32
    """
    B, F = x.shape
    o_sub = prepped["w4"].shape[0]          # out_features rounded up to 8

    # Batch (lane-axis) tiling.  Pad by at most 7 rows so every block starts
    # inside the array; ragged last tiles are handled by Pallas.  The compute
    # is strictly per-column, so garbage columns never contaminate valid ones
    # and are sliced off below.
    B8 = _round_up(B, SUBLANE)
    if B8 != B:
        x = jnp.pad(x, ((0, B8 - B), (0, 0)))
    TB, nb = _choose_batch_tiling(B8, tile_b, num_cores)
    total = nb * TB

    # Feature-major input: batch on the lane axis, so both the input reads
    # and the (o_sub, batch) output writes are lane-dense and the kernel
    # needs no transposes.  The (F, B) transpose of x is a tiny host op.
    xt = x.T

    weight_bytes = sum(int(v.size) * v.dtype.itemsize for v in prepped.values())
    cost = pl.CostEstimate(
        flops=2 * total * (F * HIDDEN + 2 * HIDDEN * HIDDEN + HIDDEN * o_sub),
        transcendentals=0,
        bytes_accessed=int(B8 * F * 4 + weight_bytes + o_sub * total * 4))

    def fixed(shape):
        # Resident weight / bias block: constant index_map, so Pallas fetches
        # it once and keeps it in VMEM across the whole batch grid.
        return pl.BlockSpec(shape, lambda i: (0, 0))

    out = pl.pallas_call(
        _mlp_kernel,
        out_shape=jax.ShapeDtypeStruct((o_sub, total), jnp.float32),
        grid_spec=pltpu.PrefetchScalarGridSpec(
            num_scalar_prefetch=0,
            grid=(nb,),
            in_specs=[
                pl.BlockSpec((F, TB), lambda i: (0, i)),      # x (feature-major)
                fixed((HIDDEN, F)), fixed((HIDDEN, 1)),       # layer 1
                fixed((HIDDEN, HIDDEN)), fixed((HIDDEN, 1)),  # layer 2
                fixed((HIDDEN, HIDDEN)), fixed((HIDDEN, 1)),  # layer 3
                fixed((o_sub, HIDDEN)), fixed((o_sub, 1)),    # output layer
            ],
            out_specs=pl.BlockSpec((o_sub, TB), lambda i: (0, i)),
        ),
        compiler_params=pltpu.CompilerParams(
            dimension_semantics=("parallel",)),
        cost_estimate=cost,
    )(xt, prepped["w1"], prepped["b1"], prepped["w2"], prepped["b2"],
      prepped["w3"], prepped["b3"], prepped["w4"], prepped["b4"])

    return out[:out_features, :B].T


def init_params(key, input_size, output_size):
    """Deterministic init mimicking PyTorch nn.Linear defaults
    (U[-1/sqrt(fan_in), 1/sqrt(fan_in)]), weights in PyTorch (out, in) layout."""
    dims = [(input_size, HIDDEN), (HIDDEN, HIDDEN), (HIDDEN, HIDDEN),
            (HIDDEN, output_size)]
    params = {}
    for idx, (fan_in, fan_out) in enumerate(dims, start=1):
        key, kw, kb = jax.random.split(key, 3)
        bound = 1.0 / (fan_in ** 0.5)
        params[f"w{idx}"] = jax.random.uniform(
            kw, (fan_out, fan_in), jnp.float32, -bound, bound)
        params[f"b{idx}"] = jax.random.uniform(
            kb, (fan_out,), jnp.float32, -bound, bound)
    return params


def _reference_f32(x, params):
    """Pure-f32 reference matching the original PyTorch module."""
    h = jnp.maximum(x @ params["w1"].T + params["b1"], 0.0)
    h = jnp.maximum(h @ params["w2"].T + params["b2"], 0.0)
    h = jnp.maximum(h @ params["w3"].T + params["b3"], 0.0)
    return h @ params["w4"].T + params["b4"]


def _reference_mixed(x, prepped, out_features):
    """Pure-JAX mirror of the exact mixed-precision, feature-major compute."""
    cdt = prepped["w1"].dtype
    ht = jnp.dot(prepped["w1"], x.T.astype(cdt),
                 preferred_element_type=jnp.float32)
    ht = jnp.maximum(ht + prepped["b1"], 0.0)
    ht = jnp.dot(prepped["w2"], ht.astype(cdt),
                 preferred_element_type=jnp.float32)
    ht = jnp.maximum(ht + prepped["b2"], 0.0)
    ht = jnp.dot(prepped["w3"], ht.astype(cdt),
                 preferred_element_type=jnp.float32)
    ht = jnp.maximum(ht + prepped["b3"], 0.0)
    ot = jnp.dot(prepped["w4"], ht.astype(cdt),
                 preferred_element_type=jnp.float32) + prepped["b4"]
    return ot[:out_features, :].T


if __name__ == "__main__":
    input_size = 13   # heart-disease feature count
    output_size = 2

    key = jax.random.PRNGKey(0)
    key, kx1, kx2, kx3 = jax.random.split(key, 4)
    params = init_params(key, input_size, output_size)
    prepped = prepare_params(params)        # one-time prep, reused across calls
    num_cores = _tensorcores_per_device()

    # (batch, key, tile_b): single tile, ragged/padded batch, medium batch,
    # and a forced multi-tile grid (tile_b=128) regardless of core count.
    cases = [(8, kx1, 1024), (37, kx2, 1024), (200, kx3, 1024), (200, kx3, 128)]
    for batch, kx, tile_b in cases:
        x = jax.random.normal(kx, (batch, input_size), jnp.float32)
        out = heart_mi_forward(x, prepped, out_features=output_size,
                               tile_b=tile_b, num_cores=num_cores)
        out = jax.block_until_ready(out)
        assert out.shape == (batch, output_size)

        ref_mixed = _reference_mixed(x, prepped, output_size)
        ref_f32 = _reference_f32(x, params)
        assert jnp.allclose(out, ref_mixed, atol=2e-3, rtol=2e-3), (
            "kernel vs mixed-precision reference mismatch")
        # bf16 matmuls => looser tolerance against the full-f32 model.
        assert jnp.allclose(out, ref_f32, atol=5e-2, rtol=5e-2), (
            "kernel vs float32 reference mismatch")

    print("KERNEL_OK")
</pallas_src>

<mosaic_0001>
module attributes {stable_mosaic.version = 11 : i64} {
  func.func @_mlp_kernel(%arg0: i32, %arg1: memref<13x8xf32, #tpu.memory_space<vmem>>, %arg2: memref<256x13xbf16, #tpu.memory_space<vmem>>, %arg3: memref<256x1xf32, #tpu.memory_space<vmem>>, %arg4: memref<256x256xbf16, #tpu.memory_space<vmem>>, %arg5: memref<256x1xf32, #tpu.memory_space<vmem>>, %arg6: memref<256x256xbf16, #tpu.memory_space<vmem>>, %arg7: memref<256x1xf32, #tpu.memory_space<vmem>>, %arg8: memref<8x256xbf16, #tpu.memory_space<vmem>>, %arg9: memref<8x1xf32, #tpu.memory_space<vmem>>, %arg10: memref<8x8xf32, #tpu.memory_space<vmem>>) attributes {dimension_semantics = [#tpu.dimension_semantics<parallel>], iteration_bounds = array<i64: 1>, scalar_prefetch = 0 : i64, scratch_operands = 0 : i64, tpu.core_type = #tpu.core_type<tc>, window_params = [{transform_indices = @transform_0, window_bounds = array<i64: 13, 8>}, {pipeline_mode = #tpu.pipeline_mode<synchronous>, transform_indices = @transform_1, window_bounds = array<i64: 256, 13>}, {pipeline_mode = #tpu.pipeline_mode<synchronous>, transform_indices = @transform_2, window_bounds = array<i64: 256, 1>}, {pipeline_mode = #tpu.pipeline_mode<synchronous>, transform_indices = @transform_3, window_bounds = array<i64: 256, 256>}, {pipeline_mode = #tpu.pipeline_mode<synchronous>, transform_indices = @transform_4, window_bounds = array<i64: 256, 1>}, {pipeline_mode = #tpu.pipeline_mode<synchronous>, transform_indices = @transform_5, window_bounds = array<i64: 256, 256>}, {pipeline_mode = #tpu.pipeline_mode<synchronous>, transform_indices = @transform_6, window_bounds = array<i64: 256, 1>}, {pipeline_mode = #tpu.pipeline_mode<synchronous>, transform_indices = @transform_7, window_bounds = array<i64: 8, 256>}, {pipeline_mode = #tpu.pipeline_mode<synchronous>, transform_indices = @transform_8, window_bounds = array<i64: 8, 1>}, {transform_indices = @transform_9, window_bounds = array<i64: 8, 8>}]} {
    %c0 = arith.constant 0 : index
    %c0_0 = arith.constant 0 : index
    %0 = vector.load %arg2[%c0, %c0_0] : memref<256x13xbf16, #tpu.memory_space<vmem>>, vector<256x13xbf16>
    %c0_1 = arith.constant 0 : index
    %c0_2 = arith.constant 0 : index
    %1 = vector.load %arg1[%c0_1, %c0_2] : memref<13x8xf32, #tpu.memory_space<vmem>>, vector<13x8xf32>
    %2 = arith.truncf %1 : vector<13x8xf32> to vector<13x8xbf16>
    %cst = arith.constant dense<0.000000e+00> : vector<256x8xf32>
    %3 = tpu.matmul %0, %2, %cst {dimension_numbers = #tpu.dot_dimension_numbers<[1], [0], [0], [1], [0, 0, 1, 1], [], []>} : vector<256x13xbf16>, vector<13x8xbf16>, vector<256x8xf32> -> vector<256x8xf32>
    %c0_3 = arith.constant 0 : index
    %c0_4 = arith.constant 0 : index
    %4 = vector.load %arg3[%c0_3, %c0_4] : memref<256x1xf32, #tpu.memory_space<vmem>>, vector<256x1xf32>
    %5 = vector.broadcast %4 : vector<256x1xf32> to vector<256x8xf32>
    %6 = arith.addf %3, %5 : vector<256x8xf32>
    %cst_5 = arith.constant 0.000000e+00 : f32
    %7 = vector.broadcast %cst_5 : f32 to vector<256x8xf32>
    %8 = arith.maximumf %6, %7 : vector<256x8xf32>
    %c0_6 = arith.constant 0 : index
    %c0_7 = arith.constant 0 : index
    %9 = vector.load %arg4[%c0_6, %c0_7] : memref<256x256xbf16, #tpu.memory_space<vmem>>, vector<256x256xbf16>
    %10 = arith.truncf %8 : vector<256x8xf32> to vector<256x8xbf16>
    %cst_8 = arith.constant dense<0.000000e+00> : vector<256x8xf32>
    %11 = tpu.matmul %9, %10, %cst_8 {dimension_numbers = #tpu.dot_dimension_numbers<[1], [0], [0], [1], [0, 0, 1, 1], [], []>} : vector<256x256xbf16>, vector<256x8xbf16>, vector<256x8xf32> -> vector<256x8xf32>
    %c0_9 = arith.constant 0 : index
    %c0_10 = arith.constant 0 : index
    %12 = vector.load %arg5[%c0_9, %c0_10] : memref<256x1xf32, #tpu.memory_space<vmem>>, vector<256x1xf32>
    %13 = vector.broadcast %12 : vector<256x1xf32> to vector<256x8xf32>
    %14 = arith.addf %11, %13 : vector<256x8xf32>
    %cst_11 = arith.constant 0.000000e+00 : f32
    %15 = vector.broadcast %cst_11 : f32 to vector<256x8xf32>
    %16 = arith.maximumf %14, %15 : vector<256x8xf32>
    %c0_12 = arith.constant 0 : index
    %c0_13 = arith.constant 0 : index
    %17 = vector.load %arg6[%c0_12, %c0_13] : memref<256x256xbf16, #tpu.memory_space<vmem>>, vector<256x256xbf16>
    %18 = arith.truncf %16 : vector<256x8xf32> to vector<256x8xbf16>
    %cst_14 = arith.constant dense<0.000000e+00> : vector<256x8xf32>
    %19 = tpu.matmul %17, %18, %cst_14 {dimension_numbers = #tpu.dot_dimension_numbers<[1], [0], [0], [1], [0, 0, 1, 1], [], []>} : vector<256x256xbf16>, vector<256x8xbf16>, vector<256x8xf32> -> vector<256x8xf32>
    %c0_15 = arith.constant 0 : index
    %c0_16 = arith.constant 0 : index
    %20 = vector.load %arg7[%c0_15, %c0_16] : memref<256x1xf32, #tpu.memory_space<vmem>>, vector<256x1xf32>
    %21 = vector.broadcast %20 : vector<256x1xf32> to vector<256x8xf32>
    %22 = arith.addf %19, %21 : vector<256x8xf32>
    %cst_17 = arith.constant 0.000000e+00 : f32
    %23 = vector.broadcast %cst_17 : f32 to vector<256x8xf32>
    %24 = arith.maximumf %22, %23 : vector<256x8xf32>
    %c0_18 = arith.constant 0 : index
    %c0_19 = arith.constant 0 : index
    %25 = vector.load %arg8[%c0_18, %c0_19] : memref<8x256xbf16, #tpu.memory_space<vmem>>, vector<8x256xbf16>
    %26 = arith.truncf %24 : vector<256x8xf32> to vector<256x8xbf16>
    %cst_20 = arith.constant dense<0.000000e+00> : vector<8x8xf32>
    %27 = tpu.matmul %25, %26, %cst_20 {dimension_numbers = #tpu.dot_dimension_numbers<[1], [0], [0], [1], [0, 0, 1, 1], [], []>} : vector<8x256xbf16>, vector<256x8xbf16>, vector<8x8xf32> -> vector<8x8xf32>
    %c0_21 = arith.constant 0 : index
    %c0_22 = arith.constant 0 : index
    %28 = vector.load %arg9[%c0_21, %c0_22] : memref<8x1xf32, #tpu.memory_space<vmem>>, vector<8x1xf32>
    %29 = vector.broadcast %28 : vector<8x1xf32> to vector<8x8xf32>
    %30 = arith.addf %27, %29 : vector<8x8xf32>
    %c0_23 = arith.constant 0 : index
    %c0_24 = arith.constant 0 : index
    %31 = vector.load %arg10[%c0_23, %c0_24] : memref<8x8xf32, #tpu.memory_space<vmem>>, vector<8x8xf32>
    tpu.vector_store %arg10[%c0_23, %c0_24], %30 {strides = array<i32>} : memref<8x8xf32, #tpu.memory_space<vmem>>, vector<8x8xf32>,
    return
  }
  func.func @transform_0(%arg0: i32) -> (i32, i32) {
    %c0_i32 = arith.constant 0 : i32
    %c0_i32_0 = arith.constant 0 : i32
    return %c0_i32, %arg0 : i32, i32
  }
  func.func @transform_1(%arg0: i32) -> (i32, i32) {
    %c0_i32 = arith.constant 0 : i32
    %c0_i32_0 = arith.constant 0 : i32
    %c0_i32_1 = arith.constant 0 : i32
    return %c0_i32, %c0_i32_0 : i32, i32
  }
  func.func @transform_2(%arg0: i32) -> (i32, i32) {
    %c0_i32 = arith.constant 0 : i32
    %c0_i32_0 = arith.constant 0 : i32
    %c0_i32_1 = arith.constant 0 : i32
    return %c0_i32, %c0_i32_0 : i32, i32
  }
  func.func @transform_3(%arg0: i32) -> (i32, i32) {
    %c0_i32 = arith.constant 0 : i32
    %c0_i32_0 = arith.constant 0 : i32
    %c0_i32_1 = arith.constant 0 : i32
    return %c0_i32, %c0_i32_0 : i32, i32
  }
  func.func @transform_4(%arg0: i32) -> (i32, i32) {
    %c0_i32 = arith.constant 0 : i32
    %c0_i32_0 = arith.constant 0 : i32
    %c0_i32_1 = arith.constant 0 : i32
    return %c0_i32, %c0_i32_0 : i32, i32
  }
  func.func @transform_5(%arg0: i32) -> (i32, i32) {
    %c0_i32 = arith.constant 0 : i32
    %c0_i32_0 = arith.constant 0 : i32
    %c0_i32_1 = arith.constant 0 : i32
    return %c0_i32, %c0_i32_0 : i32, i32
  }
  func.func @transform_6(%arg0: i32) -> (i32, i32) {
    %c0_i32 = arith.constant 0 : i32
    %c0_i32_0 = arith.constant 0 : i32
    %c0_i32_1 = arith.constant 0 : i32
    return %c0_i32, %c0_i32_0 : i32, i32
  }
  func.func @transform_7(%arg0: i32) -> (i32, i32) {
    %c0_i32 = arith.constant 0 : i32
    %c0_i32_0 = arith.constant 0 : i32
    %c0_i32_1 = arith.constant 0 : i32
    return %c0_i32, %c0_i32_0 : i32, i32
  }
  func.func @transform_8(%arg0: i32) -> (i32, i32) {
    %c0_i32 = arith.constant 0 : i32
    %c0_i32_0 = arith.constant 0 : i32
    %c0_i32_1 = arith.constant 0 : i32
    return %c0_i32, %c0_i32_0 : i32, i32
  }
  func.func @transform_9(%arg0: i32) -> (i32, i32) {
    %c0_i32 = arith.constant 0 : i32
    %c0_i32_0 = arith.constant 0 : i32
    return %c0_i32, %arg0 : i32, i32
  }
}

</mosaic_0001>

<bundles_post_ra>
// kernel: heart_mi_forward.1
= control target key start
LH: loop header
LB: loop body
LE: loop exit
PB: predicated region body
PF: predicated region fallthrough
CT: control target
= control target key end

     0   :  { %vm389_vm0 = vcmask 1045504   ;;  %vm390_vm1 = vcmask 1046528   ;;  %v2223_v0 = vmov 0   ;;  %v2224_v4 = vmov 65535   ;;  %s3339_s2 = inlined_call_operand.vmem [shape: f32[256,1], index: 2, kind: input, shape index: {}]   ;;  %s3340_s0 = inlined_call_operand.vmem [shape: f32[13,8], index: 0, kind: input, shape index: {}]   ;;  %s3341_s1 = inlined_call_operand.vmem [shape: bf16[256,13], index: 1, kind: input, shape index: {}]   ;;  %s3342_s4 = inlined_call_operand.vmem [shape: f32[256,1], index: 4, kind: input, shape index: {}]   ;;  %s3343_s6 = inlined_call_operand.vmem [shape: f32[256,1], index: 6, kind: input, shape index: {}]   ;;  %s3344_s3 = inlined_call_operand.vmem [shape: bf16[256,256], index: 3, kind: input, shape index: {}]   ;;  %s3345_s8 = inlined_call_operand.vmem [shape: f32[8,1], index: 8, kind: input, shape index: {}]   ;;  %s3346_s5 = inlined_call_operand.vmem [shape: bf16[256,256], index: 5, kind: input, shape index: {}]   ;;  %s3347_s7 = inlined_call_operand.vmem [shape: bf16[8,256], index: 7, kind: input, shape index: {}]   ;;  %s3348_s9 = inlined_call_operand.vmem [shape: f32[8,8], index: 9, kind: output, shape index: {}]  }
   0x1   :  { %2222 = vset.pattern.permute.xlu2 %v2223_v0  ;;  %2221 = vset.pattern.permute.xlu1 %v2223_v0  ;;  %v98_v1 = vld [vmem:[%s3339_s2 + $0xf0] sm:$0xff]  ;;  %v96_v2 = vld [vmem:[%s3339_s2 + $0xe0] sm:$0xff]  ;;  %v391_v5 = vsel %vm389_vm0, 4294967295, %v2224_v4  ;;  %v66_v7 = vld [vmem:[%s3340_s0 + $0x8] sm:$0x1f]  ;;  %vm340_vm2 = vcmask 105472  }
   0x2   :  { %v82_v3 = vld [vmem:[%s3339_s2 + $0x70] sm:$0xff]  ;;  %2220 = vset.pattern.permute.xlu0 %v2223_v0  ;;  %242 = vperm.xlu2 %2222, %v96_v2   ;;  %v65_v6 = vld [vmem:[%s3340_s0] sm:$0xff]  ;;  %v392_v8 = vsel %vm390_vm1, %v391_v5, 0  ;;  %v2142_v12 = vld [vmem:[%s3341_s1 + $0x38] sm:$0xff]  ;;  %vm1793_vm3 = vcmask 64512  }
   0x3   :  { %252 = vperm.xlu0 %2220, %v98_v1   ;;  %172 = vperm.xlu1 %2221, %v82_v3   ;;  %v67_v9 = vpack.c.bf16 %v66_v7, %v65_v6  ;;  %v2135_v11 = vld [vmem:[%s3341_s1] sm:$0xff]  ;;  %v2146_v13 = vld [vmem:[%s3341_s1 + $0x58] sm:$0xff]  ;;  %v97_v15 = vld [vmem:[%s3339_s2 + $0xe8] sm:$0xff] }
   0x4   :  { %v99_v14 = vld [vmem:[%s3339_s2 + $0xf8] sm:$0xff]  ;;  %v2140_v17 = vld [vmem:[%s3341_s1 + $0x28] sm:$0xff]  ;;  %v80_v18 = vld [vmem:[%s3339_s2 + $0x60] sm:$0xff] }
   0x5   :  { %v394_v10 = vand.u32 %v392_v8, %v67_v9  ;;  %v83_v16 = vld [vmem:[%s3339_s2 + $0x78] sm:$0xff]  ;;  %v94_v19 = vld [vmem:[%s3339_s2 + $0xd0] sm:$0xff]  ;;  %v81_v20 = vld [vmem:[%s3339_s2 + $0x68] sm:$0xff] }
   0x6   :  { %v2136_v21 = vld [vmem:[%s3341_s1 + $0x8] sm:$0xff]  ;;  %v2143_v22 = vld [vmem:[%s3341_s1 + $0x40] sm:$0xff]  ;;  %v95_v24 = vld [vmem:[%s3339_s2 + $0xd8] sm:$0xff] }
   0x7   :  { %403 = vmatpush.bf16.msra.mxu0 %v394_v10  ;;  %2216 = vmatpush.bf16.msra.mxu2 %v394_v10  ;;  %v2147_v23 = vld [vmem:[%s3341_s1 + $0x60] sm:$0xff]  ;;  %v79_v25 = vld [vmem:[%s3339_s2 + $0x58] sm:$0xff]  ;;  %v78_v26 = vld [vmem:[%s3339_s2 + $0x50] sm:$0xff] }
   0x8   :  { %2217 = vmatpush.bf16.msra.mxu3 %v394_v10  ;;  %2215 = vmatpush.bf16.msra.mxu1 %v394_v10  ;;  %v2141_v27 = vld [vmem:[%s3341_s1 + $0x30] sm:$0xff]  ;;  %v92_v28 = vld [vmem:[%s3339_s2 + $0xc0] sm:$0xff]  ;;  %v93_v29 = vld [vmem:[%s3339_s2 + $0xc8] sm:$0xff] }
   0x9   :  { %v76_v30 = vld [vmem:[%s3339_s2 + $0x40] sm:$0xff]  ;;  %v2137_v31 = vld [vmem:[%s3341_s1 + $0x10] sm:$0xff]  ;;  %v2144_v32 = vld [vmem:[%s3341_s1 + $0x48] sm:$0xff] }
   0xa   :  { %1863 = vmatmul.msk.bf16.vlgmr.msra.gmra.mxu0 %vm340_vm2, %v2135_v11  ;;  %1870 = vmatmul.msk.bf16.vlgmr.msra.gmra.mxu2 %vm340_vm2, %v2142_v12  ;;  %v2148_v33 = vld [vmem:[%s3341_s1 + $0x68] sm:$0xff]  ;;  %v90_v35 = vld [vmem:[%s3339_s2 + $0xb0] sm:$0xff]  ;;  %v91_v36 = vld [vmem:[%s3339_s2 + $0xb8] sm:$0xff] }
   0xb   :  { %1874 = vmatmul.msk.bf16.vlgmr.msra.gmra.mxu3 %vm340_vm2, %v2146_v13  ;;  %257 = vperm.xlu0 %2220, %v99_v14   ;;  %v77_v34 = vld [vmem:[%s3339_s2 + $0x48] sm:$0xff]  ;;  %v74_v37 = vld [vmem:[%s3339_s2 + $0x30] sm:$0xff]  ;;  %v88_v38 = vld [vmem:[%s3339_s2 + $0xa0] sm:$0xff] }
   0xc   :  { %247 = vperm.xlu2 %2222, %v97_v15   ;;  %177 = vperm.xlu1 %2221, %v83_v16   ;;  %v75_v39 = vld [vmem:[%s3339_s2 + $0x38] sm:$0xff]  ;;  %v2145_v41 = vld [vmem:[%s3341_s1 + $0x50] sm:$0xff]  ;;  %v89_v43 = vld [vmem:[%s3339_s2 + $0xa8] sm:$0xff] }
   0xd   :  { %1868 = vmatmul.msk.bf16.vlgmr.msra.gmra.mxu1 %vm340_vm2, %v2140_v17  ;;  %v2138_v40 = vld [vmem:[%s3341_s1 + $0x18] sm:$0xff]  ;;  %v2149_v42 = vld [vmem:[%s3341_s1 + $0x70] sm:$0xff]  ;;  %v73_v44 = vld [vmem:[%s3339_s2 + $0x28] sm:$0xff] }
   0xe   :  { %v72_v45 = vld [vmem:[%s3339_s2 + $0x20] sm:$0xff]  ;;  %v86_v46 = vld [vmem:[%s3339_s2 + $0x90] sm:$0xff]  ;;  %v87_v47 = vld [vmem:[%s3339_s2 + $0x98] sm:$0xff] }
   0xf   :  { %v70_v48 = vld [vmem:[%s3339_s2 + $0x10] sm:$0xff]  ;;  %v2139_v49 = vld [vmem:[%s3341_s1 + $0x20] sm:$0xff]  ;;  %v2150_v50 = vld [vmem:[%s3341_s1 + $0x78] sm:$0xff] }
  0x10   :  { %v71_v51 = vld [vmem:[%s3339_s2 + $0x18] sm:$0xff]  ;;  %v84_v52 = vld [vmem:[%s3339_s2 + $0x80] sm:$0xff]  ;;  %v85_v53 = vld [vmem:[%s3339_s2 + $0x88] sm:$0xff] }
  0x11   :  { %v68_v54 = vld [vmem:[%s3339_s2] sm:$0xff]  ;;  %v579_v55 = vld [vmem:[%s3342_s4 + $0x70] sm:$0xff]  ;;  %v69_v56 = vld [vmem:[%s3339_s2 + $0x8] sm:$0xff] }
  0x12   :  { %v580_v57 = vld [vmem:[%s3342_s4 + $0x78] sm:$0xff]  ;;  %v578_v58 = vld [vmem:[%s3342_s4 + $0x68] sm:$0xff]  ;;  %v577_v59 = vld [vmem:[%s3342_s4 + $0x60] sm:$0xff] }
  0x13   :  { %162 = vperm.xlu0 %2220, %v80_v18   ;;  %v575_v60 = vld [vmem:[%s3342_s4 + $0x50] sm:$0xff]  ;;  %v576_v62 = vld [vmem:[%s3342_s4 + $0x58] sm:$0xff]  ;;  %v574_v0 = vld [vmem:[%s3342_s4 + $0x48] sm:$0xff] }
  0x14   :  { %232 = vperm.xlu2 %2222, %v94_v19   ;;  %167 = vperm.xlu1 %2221, %v81_v20   ;;  %v595_v61 = vld [vmem:[%s3342_s4 + $0xf0] sm:$0xff]  ;;  %v596_v63 = vld [vmem:[%s3342_s4 + $0xf8] sm:$0xff]  ;;  %v573_v1 = vld [vmem:[%s3342_s4 + $0x40] sm:$0xff] }
  0x15   :  { %v593_v2 = vld [vmem:[%s3342_s4 + $0xe0] sm:$0xff]  ;;  %v571_v3 = vld [vmem:[%s3342_s4 + $0x30] sm:$0xff]  ;;  %v594_v4 = vld [vmem:[%s3342_s4 + $0xe8] sm:$0xff] }
  0x16   :  { %v572_v7 = vld [vmem:[%s3342_s4 + $0x38] sm:$0xff]  ;;  %v591_v9 = vld [vmem:[%s3342_s4 + $0xd0] sm:$0xff]  ;;  %v569_v12 = vld [vmem:[%s3342_s4 + $0x20] sm:$0xff] }
  0x17   :  { %v592_v8 = vld [vmem:[%s3342_s4 + $0xd8] sm:$0xff]  ;;  %v589_v13 = vld [vmem:[%s3342_s4 + $0xc0] sm:$0xff]  ;;  %v570_v14 = vld [vmem:[%s3342_s4 + $0x28] sm:$0xff] }
  0x18   :  { %v590_v19 = vld [vmem:[%s3342_s4 + $0xc8] sm:$0xff]  ;;  %v568_v20 = vld [vmem:[%s3342_s4 + $0x18] sm:$0xff] }
  0x1a   :  { %1864 = vmatmul.msk.bf16.gmra.mxu0 %vm340_vm2, %v2136_v21  ;;  %1871 = vmatmul.msk.bf16.gmra.mxu2 %vm340_vm2, %v2143_v22  ;;  %v567_v21 = vld [vmem:[%s3342_s4 + $0x10] sm:$0xff] }
  0x1b   :  { %1875 = vmatmul.msk.bf16.gmra.mxu3 %vm340_vm2, %v2147_v23  ;;  %237 = vperm.xlu0 %2220, %v95_v24  }
  0x1c   :  { %157 = vperm.xlu2 %2222, %v79_v25   ;;  %152 = vperm.xlu1 %2221, %v78_v26  }
  0x1d   :  { %1869 = vmatmul.msk.bf16.gmra.mxu1 %vm340_vm2, %v2141_v27  ;;  %v587_v27 = vld [vmem:[%s3342_s4 + $0xb0] sm:$0xff] }
  0x23   :  { %222 = vperm.xlu0 %2220, %v92_v28  }
  0x24   :  { %227 = vperm.xlu1 %2221, %v93_v29   ;;  %142 = vperm.xlu2 %2222, %v76_v30   ;;  %v565_v29 = vld [vmem:[%s3342_s4] sm:$0xff]  ;;  %v588_v30 = vld [vmem:[%s3342_s4 + $0xb8] sm:$0xff] }
  0x2a   :  { %1865 = vmatmul.msk.bf16.gmra.mxu0 %vm340_vm2, %v2137_v31  ;;  %1872 = vmatmul.msk.bf16.gmra.mxu2 %vm340_vm2, %v2144_v32 }
  0x2b   :  { %1876 = vmatmul.msk.bf16.gmra.mxu3 %vm340_vm2, %v2148_v33  ;;  %147 = vperm.xlu0 %2220, %v77_v34  }
  0x2c   :  { %212 = vperm.xlu1 %2221, %v90_v35   ;;  %217 = vperm.xlu2 %2222, %v91_v36  }
  0x33   :  { %132 = vperm.xlu0 %2220, %v74_v37  }
  0x34   :  { %202 = vperm.xlu2 %2222, %v88_v38   ;;  %137 = vperm.xlu1 %2221, %v75_v39  }
  0x3a   :  { %1866 = vmatmul.msk.bf16.gmra.mxu0 %vm340_vm2, %v2138_v40  ;;  %1873 = vmatmul.msk.bf16.gmra.mxu2 %vm340_vm2, %v2145_v41  ;;  %v566_v41 = vld [vmem:[%s3342_s4 + $0x8] sm:$0xff] }
  0x3b   :  { %1877 = vmatmul.msk.bf16.gmra.mxu3 %vm340_vm2, %v2149_v42  ;;  %207 = vperm.xlu0 %2220, %v89_v43   ;;  %v586_v42 = vld [vmem:[%s3342_s4 + $0xa8] sm:$0xff]  ;;  %v585_v43 = vld [vmem:[%s3342_s4 + $0xa0] sm:$0xff] }
  0x3c   :  { %127 = vperm.xlu2 %2222, %v73_v44   ;;  %122 = vperm.xlu1 %2221, %v72_v45  }
  0x43   :  { %192 = vperm.xlu0 %2220, %v86_v46  }
  0x44   :  { %197 = vperm.xlu1 %2221, %v87_v47   ;;  %112 = vperm.xlu2 %2222, %v70_v48  }
  0x4a   :  { %1867 = vmatmul.msk.bf16.gmra.mxu0 %vm340_vm2, %v2139_v49 }
  0x4b   :  { %1878 = vmatmul.msk.bf16.gmra.mxu3 %vm340_vm2, %v2150_v50  ;;  %117 = vperm.xlu0 %2220, %v71_v51  }
  0x4c   :  { %182 = vperm.xlu1 %2221, %v84_v52   ;;  %187 = vperm.xlu2 %2222, %v85_v53   ;;  %v583_v52 = vld [vmem:[%s3342_s4 + $0x90] sm:$0xff] }
  0x53   :  { %102 = vperm.xlu0 %2220, %v68_v54  }
  0x54   :  { %669 = vperm.xlu2 %2222, %v579_v55   ;;  %107 = vperm.xlu1 %2221, %v69_v56   ;;  %v581_v55 = vld [vmem:[%s3342_s4 + $0x80] sm:$0xff]  ;;  %v584_v56 = vld [vmem:[%s3342_s4 + $0x98] sm:$0xff] }
  0x5b   :  { %674 = vperm.xlu0 %2220, %v580_v57  }
  0x5c   :  { %664 = vperm.xlu2 %2222, %v578_v58   ;;  %659 = vperm.xlu1 %2221, %v577_v59   ;;  %v2502_v15 = vpop.permute.xlu2 %242 }
  0x63   :  { %649 = vperm.xlu0 %2220, %v575_v60  }
  0x64   :  { %749 = vperm.xlu2 %2222, %v595_v61   ;;  %654 = vperm.xlu1 %2221, %v576_v62  }
  0x66   :  { %v2515_v23 = vpop.permute.xlu2 %247 }
  0x6b   :  { %754 = vperm.xlu0 %2220, %v596_v63  }
  0x6c   :  { %644 = vperm.xlu2 %2222, %v574_v0   ;;  %639 = vperm.xlu1 %2221, %v573_v1  }
  0x6e   :  { %v2532_v35 = vpop.permute.xlu2 %232 }
  0x73   :  { %739 = vperm.xlu0 %2220, %v593_v2  }
  0x74   :  { %629 = vperm.xlu2 %2222, %v571_v3   ;;  %744 = vperm.xlu1 %2221, %v594_v4   ;;  %v582_v4 = vld [vmem:[%s3342_s4 + $0x88] sm:$0xff] }
  0x75   :  { %v2480_v5 = vpop.permute.xlu0 %252  ;;  %v173_v6 = vpop.permute.xlu1 %172 }
  0x76   :  { %v158_v51 = vpop.permute.xlu2 %157 }
  0x7b   :  { %634 = vperm.xlu0 %2220, %v572_v7   ;;  %v1205_v7 = vld [vmem:[%s3343_s6 + $0xf0] sm:$0xff] }
  0x7c   :  { %734 = vperm.xlu2 %2222, %v592_v8   ;;  %729 = vperm.xlu1 %2221, %v591_v9  }
  0x7d   :  { %v2491_v10 = vpop.permute.xlu0 %257 }
  0x7e   :  { %v178_v11 = vpop.permute.xlu1 %177  ;;  %v143_v9 = vpop.permute.xlu2 %142 }
  0x83   :  { %619 = vperm.xlu0 %2220, %v569_v12  }
  0x84   :  { %719 = vperm.xlu2 %2222, %v589_v13   ;;  %624 = vperm.xlu1 %2221, %v570_v14  }
  0x85   :  { %v163_v16 = vpop.permute.xlu0 %162 }
  0x86   :  { %v168_v18 = vpop.permute.xlu1 %167 }
  0x87   :  { %v2504_v17 = vpop.f32.mrf.mxu0 }
  0x8a   :  { %v430_v22 = vpop.f32.mrf.mxu1 }
  0x8b   :  { %724 = vperm.xlu0 %2220, %v590_v19   ;;  %v1204_v19 = vld [vmem:[%s3343_s6 + $0xe8] sm:$0xff] }
  0x8c   :  { %614 = vperm.xlu2 %2222, %v568_v20   ;;  %609 = vperm.xlu1 %2221, %v567_v21  }
  0x8d   :  { %v440_v24 = vpop.f32.mrf.mxu2  ;;  %v2524_v28 = vpop.permute.xlu0 %237 }
  0x8e   :  { %v2517_v25 = vpop.f32.mrf.mxu3  ;;  %v153_v31 = vpop.permute.xlu1 %152  ;;  %v441_v32 = vadd.f32 %v440_v24, %v173_v6  ;;  %v1206_v6 = vld [vmem:[%s3343_s6 + $0xf8] sm:$0xff] }
  0x8f   :  { %v2519_v26 = vpop.f32.mrf.mxu0  ;;  %v431_v53 = vadd.f32 %v430_v22, %v153_v31  ;;  %v1190_v24 = vld [vmem:[%s3343_s6 + $0x78] sm:$0xff] }
  0x90   :  { %v499_v36 = vmax.f32 %v441_v32, 0.0 }
  0x91   :  { %v495_v60 = vmax.f32 %v431_v53, 0.0  ;;  %v1186_v53 = vld [vmem:[%s3343_s6 + $0x58] sm:$0xff] }
  0x92   :  { %v432_v33 = vpop.f32.mrf.mxu1 }
  0x93   :  { %709 = vperm.xlu0 %2220, %v587_v27   ;;  %v433_v54 = vadd.f32 %v432_v33, %v158_v51  ;;  %v2599_v27 = vpop.permute.xlu2 %217 }
  0x94   :  { %599 = vperm.xlu2 %2222, %v565_v29   ;;  %714 = vperm.xlu1 %2221, %v588_v30   ;;  %v1202_v29 = vld [vmem:[%s3343_s6 + $0xd8] sm:$0xff]  ;;  %v1201_v30 = vld [vmem:[%s3343_s6 + $0xd0] sm:$0xff] }
  0x95   :  { %v442_v34 = vpop.f32.mrf.mxu2  ;;  %v2547_v46 = vpop.permute.xlu0 %222  ;;  %v496_v61 = vmax.f32 %v433_v54, 0.0  ;;  %v1185_v54 = vld [vmem:[%s3343_s6 + $0x50] sm:$0xff] }
  0x96   :  { %v443_v37 = vadd.f32 %v442_v34, %v178_v11  ;;  %v2534_v38 = vpop.f32.mrf.mxu3  ;;  %v2549_v47 = vpop.permute.xlu1 %227 }
  0x97   :  { %v2536_v39 = vpop.f32.mrf.mxu0  ;;  %v554_v8 = vpack.c.bf16 %v496_v61, %v495_v60 }
  0x98   :  { %v500_v40 = vmax.f32 %v443_v37, 0.0  ;;  %v1187_v37 = vld [vmem:[%s3343_s6 + $0x60] sm:$0xff] }
  0x9a   :  { %v435_v44 = vpop.f32.mrf.mxu1  ;;  %v556_v45 = vpack.c.bf16 %v500_v40, %v499_v36  ;;  %v1199_v40 = vld [vmem:[%s3343_s6 + $0xc0] sm:$0xff] }
  0x9b   :  { %604 = vperm.xlu0 %2220, %v566_v41   ;;  %v436_v48 = vadd.f32 %v435_v44, %v163_v16  ;;  %v1203_v16 = vld [vmem:[%s3343_s6 + $0xe0] sm:$0xff]  ;;  %v1188_v41 = vld [vmem:[%s3343_s6 + $0x68] sm:$0xff] }
  0x9c   :  { %704 = vperm.xlu2 %2222, %v586_v42   ;;  %699 = vperm.xlu1 %2221, %v585_v43   ;;  %v2620_v42 = vpop.permute.xlu2 %202 }
  0x9d   :  { %917 = vmatpush.bf16.msrb.mxu1 %v556_v45  ;;  %v497_v58 = vmax.f32 %v436_v48, 0.0  ;;  %v2566_v0 = vpop.permute.xlu0 %147  ;;  %v2592_v20 = vpop.f32.mrf.mxu2 }
  0x9e   :  { %v2551_v49 = vpop.f32.mrf.mxu3  ;;  %v2564_v63 = vpop.permute.xlu1 %212 }
  0x9f   :  { %v2553_v50 = vpop.f32.mrf.mxu0 }
  0xa2   :  { %v437_v57 = vpop.f32.mrf.mxu1 }
  0xa3   :  { %v438_v59 = vadd.f32 %v437_v57, %v168_v18  ;;  %689 = vperm.xlu0 %2220, %v583_v52   ;;  %v1189_v18 = vld [vmem:[%s3343_s6 + $0x70] sm:$0xff]  ;;  %v1200_v52 = vld [vmem:[%s3343_s6 + $0xc8] sm:$0xff] }
  0xa4   :  { %679 = vperm.xlu2 %2222, %v581_v55   ;;  %694 = vperm.xlu1 %2221, %v584_v56   ;;  %v128_v55 = vpop.permute.xlu2 %127 }
  0xa5   :  { %v498_v62 = vmax.f32 %v438_v59, 0.0  ;;  %v133_v14 = vpop.permute.xlu0 %132  ;;  %v2609_v33 = vpop.f32.mrf.mxu2 }
  0xa6   :  { %v2568_v1 = vpop.f32.mrf.mxu3  ;;  %v138_v13 = vpop.permute.xlu1 %137 }
  0xa7   :  { %v2570_v2 = vpop.f32.mrf.mxu0  ;;  %v555_v3 = vpack.c.bf16 %v498_v62, %v497_v58 }
  0xa9   :  { %918 = vmatpush.bf16.msrb.mxu1 %v555_v3  ;;  %v1197_v3 = vld [vmem:[%s3343_s6 + $0xb0] sm:$0xff] }
  0xab   :  { %684 = vperm.xlu0 %2220, %v582_v4  }
  0xac   :  { %1364 = vperm.xlu2 %2222, %v1206_v6   ;;  %1359 = vperm.xlu1 %2221, %v1205_v7   ;;  %v1183_v6 = vld [vmem:[%s3343_s6 + $0x40] sm:$0xff]  ;;  %v1198_v7 = vld [vmem:[%s3343_s6 + $0xb8] sm:$0xff] }
  0xad   :  { %919 = vmatpush.bf16.msrb.mxu1 %v554_v8  ;;  %v2607_v31 = vpop.permute.xlu0 %207  ;;  %v2626_v45 = vpop.f32.mrf.mxu2 }
  0xae   :  { %v2581_v11 = vpop.f32.mrf.mxu3  ;;  %v123_v32 = vpop.permute.xlu1 %122 }
  0xaf   :  { %v417_v12 = vpop.f32.mrf.mxu0 }
  0xb3   :  { %1349 = vperm.xlu0 %2220, %v1203_v16  }
  0xb4   :  { %1279 = vperm.xlu2 %2222, %v1189_v18   ;;  %1354 = vperm.xlu1 %2221, %v1204_v19   ;;  %v416_v19 = vadd.f32 %v2570_v2, %v123_v32 }
  0xb5   :  { %v2622_v43 = vpop.permute.xlu0 %192  ;;  %v2643_v4 = vpop.f32.mrf.mxu2 }
  0xb6   :  { %v2594_v21 = vpop.f32.mrf.mxu3  ;;  %v2624_v44 = vpop.permute.xlu1 %197 }
  0xb7   :  { %v420_v22 = vpop.f32.mrf.mxu0 }
  0xb8   :  { %v421_v8 = vadd.f32 %v420_v22, %v133_v14 }
  0xbb   :  { %1284 = vperm.xlu0 %2220, %v1190_v24   ;;  %v491_v24 = vmax.f32 %v421_v8, 0.0  ;;  %v2152_v8 = vld [vmem:[%s3344_s3 + $0x4] sm:$0xf0] }
  0xbc   :  { %1344 = vperm.xlu2 %2222, %v1202_v29   ;;  %1339 = vperm.xlu1 %2221, %v1201_v30  }
  0xbd   :  { %v118_v57 = vpop.permute.xlu0 %117 }
  0xbe   :  { %v475_v34 = vpop.f32.mrf.mxu3  ;;  %v2637_v56 = vpop.permute.xlu1 %182 }
  0xbf   :  { %v422_v36 = vpop.f32.mrf.mxu0 }
  0xc0   :  { %v423_v61 = vadd.f32 %v422_v36, %v138_v13  ;;  %v418_v13 = vadd.f32 %v417_v12, %v128_v55  ;;  %v413_v36 = vadd.f32 %v2553_v50, %v118_v57  ;;  %v1195_v50 = vld [vmem:[%s3343_s6 + $0xa0] sm:$0xff]  ;;  %v455_v55 = vpop.f32.mrf.mxu2 }
  0xc2   :  { %v490_v30 = vmax.f32 %v418_v13, 0.0 }
  0xc3   :  { %1269 = vperm.xlu0 %2220, %v1187_v37  }
  0xc4   :  { %1329 = vperm.xlu2 %2222, %v1199_v40   ;;  %1274 = vperm.xlu1 %2221, %v1188_v41   ;;  %v113_v40 = vpop.permute.xlu2 %112  ;;  %v1184_v41 = vld [vmem:[%s3343_s6 + $0x48] sm:$0xff] }
  0xc5   :  { %v103_v32 = vpop.permute.xlu0 %102 }
  0xc6   :  { %v477_v48 = vpop.f32.mrf.mxu3  ;;  %v108_v2 = vpop.permute.xlu1 %107 }
  0xc7   :  { %v425_v51 = vpop.f32.mrf.mxu0  ;;  %v478_v14 = vadd.f32 %v477_v48, %v2515_v23  ;;  %v411_v23 = vadd.f32 %v2536_v39, %v113_v40 }
  0xc8   :  { %v426_v58 = vadd.f32 %v425_v51, %v143_v9  ;;  %v489_v51 = vmax.f32 %v416_v19, 0.0 }
  0xca   :  { %v493_v9 = vmax.f32 %v426_v58, 0.0  ;;  %v551_v57 = vpack.c.bf16 %v490_v30, %v489_v51  ;;  %v408_v58 = vadd.f32 %v2519_v26, %v108_v2  ;;  %v446_v51 = vadd.f32 %v2592_v20, %v2637_v56  ;;  %v1191_v2 = vld [vmem:[%s3343_s6 + $0x80] sm:$0xff]  ;;  %v1889_v20 = vld [vmem:[%s3344_s3 + $0x10] sm:$0xf]  ;;  %v2154_v56 = vld [vmem:[%s3344_s3 + $0x14] sm:$0xf0] }
  0xcb   :  { %1334 = vperm.xlu0 %2220, %v1200_v52  }
  0xcc   :  { %1264 = vperm.xlu2 %2222, %v1186_v53   ;;  %1259 = vperm.xlu1 %2221, %v1185_v54   ;;  %v473_v53 = vadd.f32 %v2594_v21, %v2524_v28  ;;  %v488_v54 = vmax.f32 %v413_v36, 0.0  ;;  %v468_v28 = vadd.f32 %v2568_v1, %v2549_v47  ;;  %v466_v47 = vadd.f32 %v2551_v49, %v2547_v46  ;;  %v457_v49 = vpop.f32.mrf.mxu2 }
  0xcd   :  { %v456_v36 = vadd.f32 %v455_v55, %v2620_v42 }
  0xce   :  { %v480_v59 = vpop.f32.mrf.mxu3  ;;  %v512_v21 = vmax.f32 %v473_v53, 0.0  ;;  %v509_v19 = vmax.f32 %v466_v47, 0.0  ;;  %v1176_v53 = vld [vmem:[%s3343_s6 + $0x8] sm:$0xff]  ;;  %v1907_v47 = vld [vmem:[%s3344_s3 + $0x38] sm:$0xf0] }
  0xcf   :  { %v427_v60 = vpop.f32.mrf.mxu0  ;;  %v481_v29 = vadd.f32 %v480_v59, %v2480_v5  ;;  %v1196_v5 = vld [vmem:[%s3343_s6 + $0xa8] sm:$0xff]  ;;  %v406_v59 = vadd.f32 %v2504_v17, %v103_v32  ;;  %v1181_v17 = vld [vmem:[%s3343_s6 + $0x30] sm:$0xff]  ;;  %v501_v32 = vmax.f32 %v446_v51, 0.0  ;;  %v2163_v51 = vld [vmem:[%s3344_s3 + $0x64] sm:$0xf] }
  0xd0   :  { %v428_v62 = vadd.f32 %v427_v60, %v2566_v0  ;;  %v492_v0 = vmax.f32 %v423_v61, 0.0  ;;  %v514_v60 = vmax.f32 %v478_v14, 0.0  ;;  %v487_v61 = vmax.f32 %v411_v23, 0.0 }
  0xd1   :  { %v515_v48 = vmax.f32 %v481_v29, 0.0  ;;  %v458_v29 = vadd.f32 %v457_v49, %v2607_v31  ;;  %v451_v31 = vadd.f32 %v2626_v45, %v2622_v43  ;;  %v188_v43 = vpop.permute.xlu2 %187  ;;  %v1192_v45 = vld [vmem:[%s3343_s6 + $0x88] sm:$0xff] }
  0xd2   :  { %v494_v16 = vmax.f32 %v428_v62, 0.0  ;;  %v552_v22 = vpack.c.bf16 %v492_v0, %v491_v24  ;;  %v486_v62 = vmax.f32 %v408_v58, 0.0  ;;  %v1897_v58 = vld [vmem:[%s3344_s3 + $0x20] sm:$0xf]  ;;  %v1915_v49 = vld [vmem:[%s3344_s3 + $0x48] sm:$0xf0] }
  0xd3   :  { %1319 = vperm.xlu0 %2220, %v1197_v3   ;;  %v485_v3 = vmax.f32 %v406_v59, 0.0  ;;  %v506_v40 = vmax.f32 %v458_v29, 0.0  ;;  %v2156_v59 = vld [vmem:[%s3344_s3 + $0x24] sm:$0xf0]  ;;  %v1929_v29 = vld [vmem:[%s3344_s3 + $0x60] sm:$0xf] }
  0xd4   :  { %1249 = vperm.xlu2 %2222, %v1183_v6   ;;  %1324 = vperm.xlu1 %2221, %v1198_v7   ;;  %v553_v18 = vpack.c.bf16 %v494_v16, %v493_v9  ;;  %v550_v6 = vpack.c.bf16 %v488_v54, %v487_v61  ;;  %v1193_v7 = vld [vmem:[%s3343_s6 + $0x90] sm:$0xff]  ;;  %v461_v9 = vadd.f32 %v2517_v25, %v2564_v63  ;;  %v510_v16 = vmax.f32 %v468_v28, 0.0  ;;  %v1194_v25 = vld [vmem:[%s3343_s6 + $0x98] sm:$0xff]  ;;  %v1180_v63 = vld [vmem:[%s3343_s6 + $0x28] sm:$0xff] }
  0xd5   :  { %v549_v46 = vpack.c.bf16 %v486_v62, %v485_v3  ;;  %v1175_v54 = vld [vmem:[%s3343_s6] sm:$0xff]  ;;  %v1891_v61 = vld [vmem:[%s3344_s3 + $0x18] sm:$0xf0]  ;;  %v2158_v28 = vld [vmem:[%s3344_s3 + $0x34] sm:$0xf0] }
  0xd6   :  { %920 = vmatpush.bf16.msrb.mxu1 %v553_v18  ;;  %v482_v37 = vpop.f32.mrf.mxu3  ;;  %v463_v18 = vadd.f32 %v2534_v38, %v2599_v27  ;;  %v507_v24 = vmax.f32 %v461_v9, 0.0  ;;  %v561_v30 = vpack.c.bf16 %v510_v16, %v509_v19  ;;  %v1179_v38 = vld [vmem:[%s3343_s6 + $0x20] sm:$0xff]  ;;  %v1899_v3 = vld [vmem:[%s3344_s3 + $0x28] sm:$0xf0]  ;;  %v2162_v9 = vld [vmem:[%s3344_s3 + $0x54] sm:$0xf0] }
  0xd7   :  { %v483_v12 = vadd.f32 %v482_v37, %v2491_v10  ;;  %v476_v10 = vadd.f32 %v475_v34, %v2502_v15  ;;  %v471_v15 = vadd.f32 %v2581_v11, %v2532_v35  ;;  %v1182_v35 = vld [vmem:[%s3343_s6 + $0x38] sm:$0xff]  ;;  %v1881_v11 = vld [vmem:[%s3344_s3] sm:$0xf]  ;;  %v453_v37 = vadd.f32 %v2643_v4, %v2624_v44  ;;  %v1177_v44 = vld [vmem:[%s3343_s6 + $0x10] sm:$0xff] }
  0xd8   :  { %v1882_v0 = vor.u32 %v2152_v8, %v1881_v11  ;;  %v508_v27 = vmax.f32 %v463_v18, 0.0  ;;  %v448_v4 = vadd.f32 %v2609_v33, %v188_v43  ;;  %v2151_v33 = vld [vmem:[%s3344_s3 + $0x4] sm:$0xf]  ;;  %v1921_v8 = vld [vmem:[%s3344_s3 + $0x50] sm:$0xf] }
  0xd9   :  { %v516_v52 = vmax.f32 %v483_v12, 0.0  ;;  %v513_v34 = vmax.f32 %v476_v10, 0.0  ;;  %v511_v1 = vmax.f32 %v471_v15, 0.0  ;;  %v505_v12 = vmax.f32 %v456_v36, 0.0  ;;  %v1883_v10 = vld [vmem:[%s3344_s3 + $0x8] sm:$0xf0]  ;;  %v2783_v11 = vpop.permute.xlu2 %669 }
  0xda   :  { %921 = vmatpush.bf16.msrb.mxu1 %v552_v22  ;;  %v560_v14 = vpack.c.bf16 %v508_v27, %v507_v24  ;;  %v503_v22 = vmax.f32 %v451_v31, 0.0  ;;  %v502_v23 = vmax.f32 %v448_v4, 0.0  ;;  %v1886_v55 = vor.u32 %v2151_v33, %v1883_v10  ;;  %v2155_v62 = vld [vmem:[%s3344_s3 + $0x24] sm:$0xf]  ;;  %v1945_v4 = vld [vmem:[%s3344_s3 + $0x80] sm:$0xf] }
  0xdb   :  { %1254 = vperm.xlu0 %2220, %v1184_v41   ;;  %v564_v39 = vpack.c.bf16 %v516_v52, %v515_v48  ;;  %v563_v26 = vpack.c.bf16 %v514_v60, %v513_v34  ;;  %v562_v13 = vpack.c.bf16 %v512_v21, %v511_v1  ;;  %v504_v41 = vmax.f32 %v453_v37, 0.0  ;;  %v1178_v52 = vld [vmem:[%s3343_s6 + $0x18] sm:$0xff]  ;;  %v1905_v34 = vld [vmem:[%s3344_s3 + $0x30] sm:$0xf]  ;;  %v2821_v37 = vpop.permute.xlu1 %659 }
  0xdc   :  { %1314 = vperm.xlu2 %2222, %v1196_v5   ;;  %1309 = vperm.xlu1 %2221, %v1195_v50   ;;  %v559_v42 = vpack.c.bf16 %v506_v40, %v505_v12  ;;  %v1890_v50 = vor.u32 %v2154_v56, %v1889_v20  ;;  %v557_v48 = vpack.c.bf16 %v502_v23, %v501_v32  ;;  %v1937_v40 = vld [vmem:[%s3344_s3 + $0x70] sm:$0xf]  ;;  %v2168_v20 = vld [vmem:[%s3344_s3 + $0x84] sm:$0xf0]  ;;  %v1939_v23 = vld [vmem:[%s3344_s3 + $0x78] sm:$0xf0] }
  0xdd   :  { %1006 = vmatpush.bf16.msrb.mxu2 %v564_v39  ;;  %v558_v5 = vpack.c.bf16 %v504_v41, %v503_v22  ;;  %v1898_v60 = vor.u32 %v2156_v59, %v1897_v58  ;;  %v2153_v39 = vld [vmem:[%s3344_s3 + $0x14] sm:$0xf]  ;;  %v1906_v21 = vor.u32 %v2158_v28, %v1905_v34  ;;  %v1922_v16 = vor.u32 %v2162_v9, %v1921_v8 }
  0xde   :  { %922 = vmatpush.bf16.msrb.mxu1 %v551_v57  ;;  %v1754_v57 = vld [vmem:[%s3345_s8] sm:$0xff]  ;;  %v1894_v15 = vor.u32 %v2153_v39, %v1891_v61  ;;  %v1946_v56 = vor.u32 %v2168_v20, %v1945_v4  ;;  %v1947_v61 = vld [vmem:[%s3344_s3 + $0x88] sm:$0xf0]  ;;  %v2169_v9 = vld [vmem:[%s3344_s3 + $0x94] sm:$0xf] }
  0xdf   :  { %v2167_v39 = vld [vmem:[%s3344_s3 + $0x84] sm:$0xf] }
  0xe0   :  { %v2171_v20 = vld [vmem:[%s3344_s3 + $0xa4] sm:$0xf] }
  0xe1   :  { %1007 = vmatpush.bf16.msrb.mxu2 %v563_v26  ;;  %v1902_v26 = vor.u32 %v2155_v62, %v1899_v3 }
  0xe2   :  { %923 = vmatpush.bf16.msrb.mxu1 %v550_v6  ;;  %v1913_v6 = vld [vmem:[%s3344_s3 + $0x40] sm:$0xf] }
  0xe3   :  { %1239 = vperm.xlu0 %2220, %v1181_v17   ;;  %v2160_v17 = vld [vmem:[%s3344_s3 + $0x44] sm:$0xf0]  ;;  %v2839_v43 = vpop.permute.xlu1 %654 }
  0xe4   :  { %1299 = vperm.xlu2 %2222, %v1193_v7   ;;  %1244 = vperm.xlu1 %2221, %v1182_v35   ;;  %v1914_v7 = vor.u32 %v2160_v17, %v1913_v6  ;;  %v2157_v35 = vld [vmem:[%s3344_s3 + $0x34] sm:$0xf]  ;;  %v1961_v17 = vld [vmem:[%s3344_s3 + $0xa0] sm:$0xf] }
  0xe5   :  { %1008 = vmatpush.bf16.msrb.mxu2 %v562_v13  ;;  %v1910_v1 = vor.u32 %v2157_v35, %v1907_v47  ;;  %v2791_v13 = vpop.permute.xlu0 %674 }
  0xe6   :  { %924 = vmatpush.bf16.msrb.mxu1 %v549_v46  ;;  %v2159_v46 = vld [vmem:[%s3344_s3 + $0x44] sm:$0xf] }
  0xe7   :  { %v1918_v18 = vor.u32 %v2159_v46, %v1915_v49 }
  0xe9   :  { %925 = vmatmul.bf16.vlgmr.msrb.gmra.mxu1 %v1882_v0  ;;  %1009 = vmatpush.bf16.msrb.mxu2 %v561_v30  ;;  %v2799_v0 = vpop.permute.xlu2 %664  ;;  %v2164_v30 = vld [vmem:[%s3344_s3 + $0x64] sm:$0xf0] }
  0xeb   :  { %1304 = vperm.xlu0 %2220, %v1194_v25   ;;  %v1930_v25 = vor.u32 %v2164_v30, %v1929_v29  ;;  %v2851_v32 = vpop.permute.xlu1 %639 }
  0xec   :  { %1234 = vperm.xlu2 %2222, %v1180_v63   ;;  %1229 = vperm.xlu1 %2221, %v1179_v38   ;;  %v2161_v63 = vld [vmem:[%s3344_s3 + $0x54] sm:$0xf]  ;;  %v1923_v38 = vld [vmem:[%s3344_s3 + $0x58] sm:$0xf0] }
  0xed   :  { %1010 = vmatpush.bf16.msrb.mxu2 %v560_v14  ;;  %v2801_v19 = vpop.permute.xlu0 %649  ;;  %v1926_v27 = vor.u32 %v2161_v63, %v1923_v38  ;;  %v2166_v14 = vld [vmem:[%s3344_s3 + $0x74] sm:$0xf0] }
  0xee   :  { %v1938_v22 = vor.u32 %v2166_v14, %v1937_v40 }
  0xf1   :  { %1011 = vmatpush.bf16.msrb.mxu2 %v559_v42  ;;  %v2803_v24 = vpop.permute.xlu2 %749  ;;  %v1931_v42 = vld [vmem:[%s3344_s3 + $0x68] sm:$0xf0] }
  0xf3   :  { %1289 = vperm.xlu0 %2220, %v1191_v2   ;;  %v1934_v2 = vor.u32 %v2163_v51, %v1931_v42  ;;  %v1969_v51 = vld [vmem:[%s3344_s3 + $0xb0] sm:$0xf]  ;;  %v2174_v42 = vld [vmem:[%s3344_s3 + $0xb4] sm:$0xf0] }
  0xf4   :  { %1219 = vperm.xlu2 %2222, %v1177_v44   ;;  %1294 = vperm.xlu1 %2221, %v1192_v45  }
  0xf5   :  { %1012 = vmatpush.bf16.msrb.mxu2 %v558_v5  ;;  %v2817_v36 = vpop.permute.xlu0 %754 }
  0xf9   :  { %930 = vmatmul.bf16.gmra.mxu1 %v1890_v50  ;;  %1013 = vmatpush.bf16.msrb.mxu2 %v557_v48  ;;  %v2819_v31 = vpop.permute.xlu2 %644  ;;  %v2165_v50 = vld [vmem:[%s3344_s3 + $0x74] sm:$0xf] }
  0xfa   :  { %v1942_v10 = vor.u32 %v2165_v50, %v1939_v23 }
  0xfb   :  { %1224 = vperm.xlu0 %2220, %v1178_v52  }
  0xfc   :  { %1214 = vperm.xlu2 %2222, %v1176_v53   ;;  %1209 = vperm.xlu1 %2221, %v1175_v54   ;;  %v2863_v53 = vpop.permute.xlu1 %744 }
  0xfd   :  { %1014 = vmatmul.bf16.vlgmr.msrb.gmra.mxu2 %v1886_v55  ;;  %v2829_v12 = vpop.permute.xlu0 %739  ;;  %v1953_v55 = vld [vmem:[%s3344_s3 + $0x90] sm:$0xf] }
 0x101   :  { %v2831_v41 = vpop.permute.xlu2 %629 }
 0x103   :  { %1757 = vperm.xlu0 %2220, %v1754_v57   ;;  %v2170_v57 = vld [vmem:[%s3344_s3 + $0x94] sm:$0xf0] }
 0x104   :  { %v1954_v59 = vor.u32 %v2170_v57, %v1953_v55  ;;  %v2879_v34 = vpop.permute.xlu1 %729 }
 0x105   :  { %v2841_v44 = vpop.permute.xlu0 %634 }
 0x109   :  { %935 = vmatmul.bf16.gmra.mxu1 %v1898_v60  ;;  %v2843_v45 = vpop.permute.xlu2 %734 }
 0x10c   :  { %v625_v35 = vpop.permute.xlu1 %624 }
 0x10d   :  { %1019 = vmatmul.bf16.gmra.mxu2 %v1894_v15  ;;  %v2859_v33 = vpop.permute.xlu0 %619  ;;  %v1950_v15 = vor.u32 %v2167_v39, %v1947_v61 }
 0x111   :  { %v2861_v48 = vpop.permute.xlu2 %719 }
 0x114   :  { %v610_v38 = vpop.permute.xlu1 %609 }
 0x115   :  { %v2865_v54 = vpop.permute.xlu0 %724 }
 0x119   :  { %940 = vmatmul.bf16.gmra.mxu1 %v1906_v21  ;;  %v615_v58 = vpop.permute.xlu2 %614 }
 0x11d   :  { %1024 = vmatmul.bf16.gmra.mxu2 %v1902_v26  ;;  %v2881_v28 = vpop.permute.xlu0 %709 }
 0x121   :  { %v600_v21 = vpop.permute.xlu2 %599 }
 0x129   :  { %945 = vmatmul.bf16.gmra.mxu1 %v1914_v7  ;;  %v2172_v7 = vld [vmem:[%s3344_s3 + $0xa4] sm:$0xf0] }
 0x12a   :  { %v1962_v47 = vor.u32 %v2172_v7, %v1961_v17 }
 0x12d   :  { %1029 = vmatmul.bf16.gmra.mxu2 %v1910_v1  ;;  %v605_v1 = vpop.permute.xlu0 %604 }
 0x139   :  { %950 = vmatmul.bf16.gmra.mxu1 %v1922_v16  ;;  %v1955_v16 = vld [vmem:[%s3344_s3 + $0x98] sm:$0xf0] }
 0x13a   :  { %v1958_v29 = vor.u32 %v2169_v9, %v1955_v16 }
 0x13d   :  { %1034 = vmatmul.bf16.gmra.mxu2 %v1918_v18 }
 0x149   :  { %955 = vmatmul.bf16.gmra.mxu1 %v1930_v25 }
 0x14d   :  { %1039 = vmatmul.bf16.gmra.mxu2 %v1926_v27 }
 0x159   :  { %960 = vmatmul.bf16.gmra.mxu1 %v1938_v22 }
 0x15d   :  { %1044 = vmatmul.bf16.gmra.mxu2 %v1934_v2  ;;  %v1970_v2 = vor.u32 %v2174_v42, %v1969_v51 }
 0x166   :  { %v926_v5 = vpop.f32.mrf.mxu1 }
 0x167   :  { %v927_v3 = vadd.f32 %v926_v5, %v600_v21 }
 0x169   :  { %965 = vmatmul.bf16.gmra.mxu1 %v1946_v56  ;;  %v1963_v56 = vld [vmem:[%s3344_s3 + $0xa8] sm:$0xf0] }
 0x16d   :  { %1049 = vmatmul.bf16.gmra.mxu2 %v1942_v10  ;;  %v1966_v10 = vor.u32 %v2171_v20, %v1963_v56 }
 0x16e   :  { %v928_v52 = vpop.f32.mrf.mxu1 }
 0x16f   :  { %v929_v46 = vadd.f32 %v928_v52, %v605_v1 }
 0x176   :  { %v931_v60 = vpop.f32.mrf.mxu1 }
 0x177   :  { %v932_v40 = vadd.f32 %v931_v60, %v610_v38 }
 0x179   :  { %970 = vmatmul.bf16.gmra.mxu1 %v1954_v59 }
 0x17d   :  { %1054 = vmatmul.bf16.gmra.mxu2 %v1950_v15  ;;  %v1977_v15 = vld [vmem:[%s3344_s3 + $0xc0] sm:$0xf] }
 0x17e   :  { %v933_v62 = vpop.f32.mrf.mxu1 }
 0x17f   :  { %v934_v5 = vadd.f32 %v933_v62, %v615_v58  ;;  %v2176_v58 = vld [vmem:[%s3344_s3 + $0xc4] sm:$0xf0] }
 0x180   :  { %v1015_v26 = vpop.f32.mrf.mxu2  ;;  %v1978_v21 = vor.u32 %v2176_v58, %v1977_v15 }
 0x181   :  { %v1016_v6 = vadd.f32 %v1015_v26, %v927_v3  ;;  %v2173_v3 = vld [vmem:[%s3344_s3 + $0xb4] sm:$0xf] }
 0x183   :  { %v1095_v30 = vmax.f32 %v1016_v6, 0.0 }
 0x186   :  { %v936_v8 = vpop.f32.mrf.mxu1 }
 0x187   :  { %v937_v60 = vadd.f32 %v936_v8, %v2859_v33  ;;  %v1971_v33 = vld [vmem:[%s3344_s3 + $0xb8] sm:$0xf0] }
 0x188   :  { %v1017_v49 = vpop.f32.mrf.mxu2  ;;  %v1974_v7 = vor.u32 %v2173_v3, %v1971_v33 }
 0x189   :  { %v1018_v18 = vadd.f32 %v1017_v49, %v929_v46  ;;  %975 = vmatmul.bf16.gmra.mxu1 %v1962_v47 }
 0x18b   :  { %v1096_v25 = vmax.f32 %v1018_v18, 0.0  ;;  %v1985_v18 = vld [vmem:[%s3344_s3 + $0xd0] sm:$0xf] }
 0x18d   :  { %1059 = vmatmul.bf16.gmra.mxu2 %v1958_v29  ;;  %v2895_v63 = vpack.c.bf16 %v1096_v25, %v1095_v30  ;;  %v2175_v25 = vld [vmem:[%s3344_s3 + $0xc4] sm:$0xf] }
 0x18e   :  { %v938_v27 = vpop.f32.mrf.mxu1 }
 0x18f   :  { %v939_v26 = vadd.f32 %v938_v27, %v625_v35  ;;  %v2178_v35 = vld [vmem:[%s3344_s3 + $0xd4] sm:$0xf0] }
 0x190   :  { %v1020_v14 = vpop.f32.mrf.mxu2  ;;  %v1986_v29 = vor.u32 %v2178_v35, %v1985_v18  ;;  %v2979_v18 = vpop.permute.xlu2 %704 }
 0x191   :  { %v1021_v22 = vadd.f32 %v1020_v14, %v932_v40 }
 0x193   :  { %v1097_v52 = vmax.f32 %v1021_v22, 0.0 }
 0x196   :  { %v941_v4 = vpop.f32.mrf.mxu1 }
 0x197   :  { %v942_v16 = vadd.f32 %v941_v4, %v2831_v41  ;;  %v1979_v41 = vld [vmem:[%s3344_s3 + $0xc8] sm:$0xf0] }
 0x198   :  { %v1022_v50 = vpop.f32.mrf.mxu2  ;;  %v1982_v14 = vor.u32 %v2175_v25, %v1979_v41 }
 0x199   :  { %v1023_v23 = vadd.f32 %v1022_v50, %v934_v5  ;;  %980 = vmatmul.bf16.gmra.mxu1 %v1970_v2  ;;  %v1993_v5 = vld [vmem:[%s3344_s3 + $0xe0] sm:$0xf] }
 0x19b   :  { %v1098_v55 = vmax.f32 %v1023_v23, 0.0 }
 0x19d   :  { %1064 = vmatmul.bf16.gmra.mxu2 %v1966_v10  ;;  %v2909_v57 = vpack.c.bf16 %v1098_v55, %v1097_v52  ;;  %v2177_v10 = vld [vmem:[%s3344_s3 + $0xd4] sm:$0xf] }
 0x19e   :  { %v943_v59 = vpop.f32.mrf.mxu1 }
 0x19f   :  { %v944_v38 = vadd.f32 %v943_v59, %v2841_v44  ;;  %v2180_v44 = vld [vmem:[%s3344_s3 + $0xe4] sm:$0xf0] }
 0x1a0   :  { %v1025_v39 = vpop.f32.mrf.mxu2  ;;  %v1994_v50 = vor.u32 %v2180_v44, %v1993_v5  ;;  %v690_v44 = vpop.permute.xlu0 %689 }
 0x1a1   :  { %v1026_v61 = vadd.f32 %v1025_v39, %v937_v60  ;;  %v2001_v39 = vld [vmem:[%s3344_s3 + $0xf0] sm:$0xf] }
 0x1a3   :  { %v1099_v47 = vmax.f32 %v1026_v61, 0.0  ;;  %v2182_v61 = vld [vmem:[%s3344_s3 + $0xf4] sm:$0xf0] }
 0x1a4   :  { %v2002_v15 = vor.u32 %v2182_v61, %v2001_v39 }
 0x1a6   :  { %v946_v62 = vpop.f32.mrf.mxu1 }
 0x1a7   :  { %v947_v4 = vadd.f32 %v946_v62, %v2851_v32  ;;  %v1987_v32 = vld [vmem:[%s3344_s3 + $0xd8] sm:$0xf0]  ;;  %v1995_v62 = vld [vmem:[%s3344_s3 + $0xe8] sm:$0xf0] }
 0x1a8   :  { %v1027_v6 = vpop.f32.mrf.mxu2  ;;  %v1990_v55 = vor.u32 %v2177_v10, %v1987_v32  ;;  %v680_v32 = vpop.permute.xlu2 %679 }
 0x1a9   :  { %v1028_v17 = vadd.f32 %v1027_v6, %v939_v26  ;;  %985 = vmatmul.bf16.gmra.mxu1 %v1978_v21  ;;  %v2179_v21 = vld [vmem:[%s3344_s3 + $0xe4] sm:$0xf] }
 0x1aa   :  { %v1998_v33 = vor.u32 %v2179_v21, %v1995_v62  ;;  %v685_v62 = vpop.permute.xlu0 %684 }
 0x1ab   :  { %v1100_v1 = vmax.f32 %v1028_v17, 0.0 }
 0x1ad   :  { %1069 = vmatmul.bf16.gmra.mxu2 %v1974_v7  ;;  %v2924_v8 = vpack.c.bf16 %v1100_v1, %v1099_v47  ;;  %v2181_v7 = vld [vmem:[%s3344_s3 + $0xf4] sm:$0xf]  ;;  %v2003_v47 = vld [vmem:[%s3344_s3 + $0xf8] sm:$0xf0] }
 0x1ae   :  { %v2926_v9 = vpop.f32.mrf.mxu1 }
 0x1b0   :  { %v1030_v46 = vpop.f32.mrf.mxu2 }
 0x1b1   :  { %v1031_v49 = vadd.f32 %v1030_v46, %v942_v16  ;;  %v2006_v16 = vor.u32 %v2181_v7, %v2003_v47 }
 0x1b3   :  { %v1101_v22 = vmax.f32 %v1031_v49, 0.0 }
 0x1b6   :  { %v2935_v30 = vpop.f32.mrf.mxu1 }
 0x1b8   :  { %v1032_v27 = vpop.f32.mrf.mxu2 }
 0x1b9   :  { %v1033_v40 = vadd.f32 %v1032_v27, %v944_v38  ;;  %990 = vmatmul.bf16.gmra.mxu1 %v1986_v29 }
 0x1bb   :  { %v1102_v51 = vmax.f32 %v1033_v40, 0.0 }
 0x1bd   :  { %1074 = vmatmul.bf16.gmra.mxu2 %v1982_v14  ;;  %v2944_v42 = vpack.c.bf16 %v1102_v51, %v1101_v22 }
 0x1be   :  { %v953_v2 = vpop.f32.mrf.mxu1 }
 0x1bf   :  { %v954_v51 = vadd.f32 %v953_v2, %v2839_v43 }
 0x1c0   :  { %v1035_v20 = vpop.f32.mrf.mxu2 }
 0x1c1   :  { %v2947_v56 = vadd.f32 %v1035_v20, %v947_v4 }
 0x1c6   :  { %v956_v23 = vpop.f32.mrf.mxu1 }
 0x1c7   :  { %v957_v40 = vadd.f32 %v956_v23, %v2821_v37 }
 0x1c8   :  { %v1037_v52 = vpop.f32.mrf.mxu2 }
 0x1c9   :  { %995 = vmatmul.bf16.gmra.mxu1 %v1994_v50 }
 0x1cd   :  { %1079 = vmatmul.bf16.gmra.mxu2 %v1990_v55  ;;  %v949_v55 = vadd.f32 %v2926_v9, %v2819_v31 }
 0x1ce   :  { %v958_v59 = vpop.f32.mrf.mxu1 }
 0x1cf   :  { %v959_v25 = vadd.f32 %v958_v59, %v2799_v0  ;;  %v1038_v2 = vadd.f32 %v1037_v52, %v949_v55 }
 0x1d0   :  { %v1040_v60 = vpop.f32.mrf.mxu2 }
 0x1d6   :  { %v961_v58 = vpop.f32.mrf.mxu1 }
 0x1d7   :  { %v962_v35 = vadd.f32 %v961_v58, %v2783_v11  ;;  %v952_v11 = vadd.f32 %v2935_v30, %v2801_v19  ;;  %v715_v58 = vpop.permute.xlu1 %714  ;;  %v1104_v19 = vmax.f32 %v1038_v2, 0.0 }
 0x1d8   :  { %v1042_v3 = vpop.f32.mrf.mxu2 }
 0x1d9   :  { %1000 = vmatmul.bf16.gmra.mxu1 %v2002_v15  ;;  %v1043_v50 = vadd.f32 %v1042_v3, %v954_v51  ;;  %v1041_v37 = vadd.f32 %v1040_v60, %v952_v11 }
 0x1db   :  { %v1106_v39 = vmax.f32 %v1043_v50, 0.0  ;;  %v1105_v21 = vmax.f32 %v1041_v37, 0.0 }
 0x1dd   :  { %1084 = vmatmul.bf16.gmra.mxu2 %v1998_v33  ;;  %v1164_v30 = vpack.c.bf16 %v1106_v39, %v1105_v21  ;;  %v1103_v33 = vmax.f32 %v2947_v56, 0.0 }
 0x1de   :  { %v963_v26 = vpop.f32.mrf.mxu1 }
 0x1df   :  { %v964_v41 = vadd.f32 %v963_v26, %v2791_v13  ;;  %v1163_v60 = vpack.c.bf16 %v1104_v19, %v1103_v33  ;;  %v700_v52 = vpop.permute.xlu1 %699  ;;  %v2190_v33 = vld [vmem:[%s3346_s5 + $0x34] sm:$0xf0] }
 0x1e0   :  { %v1045_v6 = vpop.f32.mrf.mxu2 }
 0x1e1   :  { %v1046_v4 = vadd.f32 %v1045_v6, %v957_v40 }
 0x1e3   :  { %v1107_v23 = vmax.f32 %v1046_v4, 0.0 }
 0x1e6   :  { %v966_v17 = vpop.f32.mrf.mxu1 }
 0x1e7   :  { %v967_v59 = vadd.f32 %v966_v17, %v680_v32  ;;  %v695_v56 = vpop.permute.xlu1 %694 }
 0x1e8   :  { %v1047_v1 = vpop.f32.mrf.mxu2 }
 0x1e9   :  { %v1048_v14 = vadd.f32 %v1047_v1, %v959_v25  ;;  %v2184_v25 = vld [vmem:[%s3346_s5 + $0x4] sm:$0xf0] }
 0x1eb   :  { %v1108_v10 = vmax.f32 %v1048_v14, 0.0 }
 0x1ed   :  { %1089 = vmatmul.bf16.gmra.mxu2 %v2006_v16  ;;  %v1165_v15 = vpack.c.bf16 %v1108_v10, %v1107_v23  ;;  %v2025_v23 = vld [vmem:[%s3346_s5 + $0x20] sm:$0xf] }
 0x1ee   :  { %v968_v46 = vpop.f32.mrf.mxu1 }
 0x1ef   :  { %v969_v26 = vadd.f32 %v968_v46, %v685_v62 }
 0x1f0   :  { %v1050_v49 = vpop.f32.mrf.mxu2 }
 0x1f1   :  { %v1051_v38 = vadd.f32 %v1050_v49, %v962_v35  ;;  %v2009_v35 = vld [vmem:[%s3346_s5] sm:$0xf] }
 0x1f3   :  { %v1109_v20 = vmax.f32 %v1051_v38, 0.0  ;;  %v2010_v38 = vor.u32 %v2184_v25, %v2009_v35 }
 0x1f6   :  { %v971_v29 = vpop.f32.mrf.mxu1 }
 0x1f7   :  { %v972_v47 = vadd.f32 %v971_v29, %v690_v44 }
 0x1f8   :  { %v1052_v27 = vpop.f32.mrf.mxu2 }
 0x1f9   :  { %v1053_v22 = vadd.f32 %v1052_v27, %v964_v41 }
 0x1fb   :  { %v1110_v5 = vmax.f32 %v1053_v22, 0.0 }
 0x1fd   :  { %v1166_v0 = vpack.c.bf16 %v1110_v5, %v1109_v20  ;;  %v2017_v20 = vld [vmem:[%s3346_s5 + $0x10] sm:$0xf]  ;;  %v2186_v5 = vld [vmem:[%s3346_s5 + $0x14] sm:$0xf0] }
 0x1fe   :  { %v973_v13 = vpop.f32.mrf.mxu1 }
 0x1ff   :  { %1527 = vmatpush.bf16.msrb.mxu3 %v1166_v0  ;;  %v974_v46 = vadd.f32 %v973_v13, %v695_v56  ;;  %v2194_v56 = vld [vmem:[%s3346_s5 + $0x54] sm:$0xf0] }
 0x200   :  { %v1055_v43 = vpop.f32.mrf.mxu2 }
 0x201   :  { %v1056_v61 = vadd.f32 %v1055_v43, %v967_v59  ;;  %v2188_v59 = vld [vmem:[%s3346_s5 + $0x24] sm:$0xf0] }
 0x203   :  { %1528 = vmatpush.bf16.msrb.mxu3 %v1165_v15  ;;  %v1111_v6 = vmax.f32 %v1056_v61, 0.0  ;;  %v2026_v61 = vor.u32 %v2188_v59, %v2025_v23 }
 0x206   :  { %v976_v3 = vpop.f32.mrf.mxu1 }
 0x207   :  { %1529 = vmatpush.bf16.msrb.mxu3 %v1164_v30 }
 0x208   :  { %v1057_v31 = vpop.f32.mrf.mxu2 }
 0x209   :  { %v1058_v9 = vadd.f32 %v1057_v31, %v969_v26 }
 0x20b   :  { %v1112_v17 = vmax.f32 %v1058_v9, 0.0  ;;  %1530 = vmatpush.bf16.msrb.mxu3 %v1163_v60 }
 0x20d   :  { %v2991_v7 = vpack.c.bf16 %v1112_v17, %v1111_v6  ;;  %v2192_v17 = vld [vmem:[%s3346_s5 + $0x44] sm:$0xf0] }
 0x20e   :  { %v978_v1 = vpop.f32.mrf.mxu1 }
 0x20f   :  { %1531 = vmatpush.bf16.msrb.mxu3 %v2944_v42  ;;  %v979_v4 = vadd.f32 %v978_v1, %v2979_v18 }
 0x210   :  { %v1060_v16 = vpop.f32.mrf.mxu2 }
 0x211   :  { %v1061_v49 = vadd.f32 %v1060_v16, %v972_v47 }
 0x213   :  { %1532 = vmatpush.bf16.msrb.mxu3 %v2924_v8  ;;  %v1113_v27 = vmax.f32 %v1061_v49, 0.0  ;;  %v2049_v49 = vld [vmem:[%s3346_s5 + $0x50] sm:$0xf] }
 0x214   :  { %v2050_v25 = vor.u32 %v2194_v56, %v2049_v49  ;;  %v2189_v49 = vld [vmem:[%s3346_s5 + $0x34] sm:$0xf]  ;;  %v2035_v56 = vld [vmem:[%s3346_s5 + $0x38] sm:$0xf0] }
 0x216   :  { %v981_v42 = vpop.f32.mrf.mxu1 }
 0x217   :  { %1533 = vmatpush.bf16.msrb.mxu3 %v2909_v57  ;;  %v977_v57 = vadd.f32 %v976_v3, %v700_v52  ;;  %v982_v13 = vadd.f32 %v981_v42, %v2881_v28  ;;  %v2033_v3 = vld [vmem:[%s3346_s5 + $0x30] sm:$0xf] }
 0x218   :  { %v1062_v29 = vpop.f32.mrf.mxu2  ;;  %v2034_v31 = vor.u32 %v2190_v33, %v2033_v3  ;;  %v3089_v33 = vpop.permute.xlu1 %1359 }
 0x219   :  { %v1063_v41 = vadd.f32 %v1062_v29, %v974_v46 }
 0x21b   :  { %v1114_v40 = vmax.f32 %v1063_v41, 0.0  ;;  %1534 = vmatpush.bf16.msrb.mxu3 %v2895_v63  ;;  %v2018_v63 = vor.u32 %v2186_v5, %v2017_v20 }
 0x21d   :  { %v3003_v8 = vpack.c.bf16 %v1114_v40, %v1113_v27 }
 0x21e   :  { %1535 = vmatmul.bf16.vlgmr.msrb.gmra.mxu3 %v2010_v38  ;;  %v983_v51 = vpop.f32.mrf.mxu1 }
 0x21f   :  { %v984_v37 = vadd.f32 %v983_v51, %v715_v58 }
 0x220   :  { %v1065_v14 = vpop.f32.mrf.mxu2 }
 0x221   :  { %v1066_v22 = vadd.f32 %v1065_v14, %v977_v57  ;;  %v2057_v57 = vld [vmem:[%s3346_s5 + $0x60] sm:$0xf]  ;;  %v2196_v14 = vld [vmem:[%s3346_s5 + $0x64] sm:$0xf0] }
 0x222   :  { %v2058_v5 = vor.u32 %v2196_v14, %v2057_v57  ;;  %v2208_v57 = vld [vmem:[%s3346_s5 + $0xc4] sm:$0xf0]  ;;  %v2191_v14 = vld [vmem:[%s3346_s5 + $0x44] sm:$0xf] }
 0x223   :  { %v1115_v50 = vmax.f32 %v1066_v22, 0.0 }
 0x226   :  { %v986_v32 = vpop.f32.mrf.mxu1 }
 0x227   :  { %v987_v28 = vadd.f32 %v986_v32, %v2861_v48  ;;  %v2041_v48 = vld [vmem:[%s3346_s5 + $0x40] sm:$0xf] }
 0x228   :  { %v1067_v44 = vpop.f32.mrf.mxu2  ;;  %v2042_v47 = vor.u32 %v2192_v17, %v2041_v48  ;;  %v3103_v17 = vpop.permute.xlu2 %1364 }
 0x229   :  { %v1068_v11 = vadd.f32 %v1067_v44, %v979_v4 }
 0x22b   :  { %v1116_v10 = vmax.f32 %v1068_v11, 0.0 }
 0x22d   :  { %v3012_v0 = vpack.c.bf16 %v1116_v10, %v1115_v50 }
 0x22e   :  { %1540 = vmatmul.bf16.gmra.mxu3 %v2018_v63  ;;  %v988_v43 = vpop.f32.mrf.mxu1 }
 0x22f   :  { %v989_v32 = vadd.f32 %v988_v43, %v2865_v54  ;;  %v2198_v54 = vld [vmem:[%s3346_s5 + $0x74] sm:$0xf0] }
 0x230   :  { %v1070_v18 = vpop.f32.mrf.mxu2 }
 0x231   :  { %v1071_v55 = vadd.f32 %v1070_v18, %v982_v13 }
 0x233   :  { %v1117_v15 = vmax.f32 %v1071_v55, 0.0 }
 0x236   :  { %v991_v62 = vpop.f32.mrf.mxu1 }
 0x237   :  { %v992_v11 = vadd.f32 %v991_v62, %v2879_v34  ;;  %v2065_v34 = vld [vmem:[%s3346_s5 + $0x70] sm:$0xf]  ;;  %v2019_v62 = vld [vmem:[%s3346_s5 + $0x18] sm:$0xf0] }
 0x238   :  { %v1072_v2 = vpop.f32.mrf.mxu2 }
 0x239   :  { %v1073_v39 = vadd.f32 %v1072_v2, %v984_v37 }
 0x23b   :  { %v1118_v21 = vmax.f32 %v1073_v39, 0.0  ;;  %v2066_v39 = vor.u32 %v2198_v54, %v2065_v34  ;;  %v2195_v34 = vld [vmem:[%s3346_s5 + $0x64] sm:$0xf]  ;;  %v2059_v54 = vld [vmem:[%s3346_s5 + $0x68] sm:$0xf0] }
 0x23d   :  { %v3021_v19 = vpack.c.bf16 %v1118_v21, %v1117_v15  ;;  %v2200_v15 = vld [vmem:[%s3346_s5 + $0x84] sm:$0xf0]  ;;  %v2183_v21 = vld [vmem:[%s3346_s5 + $0x4] sm:$0xf] }
 0x23e   :  { %1545 = vmatmul.bf16.gmra.mxu3 %v2026_v61  ;;  %v993_v9 = vpop.f32.mrf.mxu1  ;;  %v2073_v61 = vld [vmem:[%s3346_s5 + $0x80] sm:$0xf] }
 0x240   :  { %v1075_v58 = vpop.f32.mrf.mxu2 }
 0x241   :  { %v1076_v30 = vadd.f32 %v1075_v58, %v987_v28  ;;  %v2074_v28 = vor.u32 %v2200_v15, %v2073_v61  ;;  %v2202_v58 = vld [vmem:[%s3346_s5 + $0x94] sm:$0xf0]  ;;  %v2062_v15 = vor.u32 %v2195_v34, %v2059_v54 }
 0x243   :  { %v1119_v2 = vmax.f32 %v1076_v30, 0.0  ;;  %v2185_v30 = vld [vmem:[%s3346_s5 + $0x14] sm:$0xf] }
 0x246   :  { %v996_v6 = vpop.f32.mrf.mxu1 }
 0x247   :  { %v997_v51 = vadd.f32 %v996_v6, %v2829_v12 }
 0x248   :  { %v1077_v26 = vpop.f32.mrf.mxu2 }
 0x249   :  { %v1078_v12 = vadd.f32 %v1077_v26, %v989_v32  ;;  %v2089_v26 = vld [vmem:[%s3346_s5 + $0xa0] sm:$0xf]  ;;  %v2051_v32 = vld [vmem:[%s3346_s5 + $0x58] sm:$0xf0] }
 0x24e   :  { %1550 = vmatmul.bf16.gmra.mxu3 %v2034_v31  ;;  %v998_v1 = vpop.f32.mrf.mxu1  ;;  %v2204_v31 = vld [vmem:[%s3346_s5 + $0xa4] sm:$0xf0] }
 0x24f   :  { %v999_v38 = vadd.f32 %v998_v1, %v2863_v53  ;;  %v2090_v6 = vor.u32 %v2204_v31, %v2089_v26  ;;  %v3110_v1 = vpop.permute.xlu2 %1279 }
 0x250   :  { %v1080_v60 = vpop.f32.mrf.mxu2 }
 0x251   :  { %v1081_v13 = vadd.f32 %v1080_v60, %v992_v11  ;;  %v2027_v60 = vld [vmem:[%s3346_s5 + $0x28] sm:$0xf0]  ;;  %v2113_v11 = vld [vmem:[%s3346_s5 + $0xd0] sm:$0xf] }
 0x253   :  { %v1121_v23 = vmax.f32 %v1081_v13, 0.0 }
 0x256   :  { %v1001_v35 = vpop.f32.mrf.mxu1 }
 0x257   :  { %v1002_v42 = vadd.f32 %v1001_v35, %v2803_v24  ;;  %v994_v24 = vadd.f32 %v993_v9, %v2843_v45  ;;  %v1120_v45 = vmax.f32 %v1078_v12, 0.0  ;;  %v2187_v9 = vld [vmem:[%s3346_s5 + $0x24] sm:$0xf] }
 0x258   :  { %v1082_v52 = vpop.f32.mrf.mxu2  ;;  %v2030_v48 = vor.u32 %v2187_v9, %v2027_v60 }
 0x259   :  { %v1083_v63 = vadd.f32 %v1082_v52, %v994_v24  ;;  %v1171_v43 = vpack.c.bf16 %v1120_v45, %v1119_v2  ;;  %v3105_v52 = vpop.permute.xlu1 %1354  ;;  %v2212_v2 = vld [vmem:[%s3346_s5 + $0xe4] sm:$0xf0] }
 0x25b   :  { %v1122_v55 = vmax.f32 %v1083_v63, 0.0 }
 0x25d   :  { %v1172_v59 = vpack.c.bf16 %v1122_v55, %v1121_v23 }
 0x25e   :  { %1555 = vmatmul.bf16.gmra.mxu3 %v2042_v47  ;;  %v1003_v41 = vpop.f32.mrf.mxu1  ;;  %v2097_v47 = vld [vmem:[%s3346_s5 + $0xb0] sm:$0xf] }
 0x25f   :  { %v1004_v27 = vadd.f32 %v1003_v41, %v2817_v36  ;;  %v3125_v41 = vpop.permute.xlu2 %1344 }
 0x260   :  { %v1085_v16 = vpop.f32.mrf.mxu2 }
 0x261   :  { %v1086_v53 = vadd.f32 %v1085_v16, %v997_v51  ;;  %v2206_v16 = vld [vmem:[%s3346_s5 + $0xb4] sm:$0xf0]  ;;  %v3123_v35 = vpop.permute.xlu1 %1339 }
 0x263   :  { %v1123_v18 = vmax.f32 %v1086_v53, 0.0 }
 0x268   :  { %v1087_v46 = vpop.f32.mrf.mxu2 }
 0x269   :  { %v1088_v4 = vadd.f32 %v1087_v46, %v999_v38  ;;  %v3129_v38 = vpop.permute.xlu1 %1274 }
 0x26b   :  { %v1124_v50 = vmax.f32 %v1088_v4, 0.0 }
 0x26d   :  { %v1173_v37 = vpack.c.bf16 %v1124_v50, %v1123_v18  ;;  %v2210_v50 = vld [vmem:[%s3346_s5 + $0xd4] sm:$0xf0] }
 0x26e   :  { %1560 = vmatmul.bf16.gmra.mxu3 %v2050_v25  ;;  %v2098_v25 = vor.u32 %v2206_v16, %v2097_v47  ;;  %v2114_v13 = vor.u32 %v2210_v50, %v2113_v11  ;;  %v2199_v16 = vld [vmem:[%s3346_s5 + $0x84] sm:$0xf] }
 0x270   :  { %v1090_v29 = vpop.f32.mrf.mxu2 }
 0x271   :  { %v1091_v40 = vadd.f32 %v1090_v29, %v1002_v42  ;;  %v2038_v29 = vor.u32 %v2189_v49, %v2035_v56  ;;  %v3149_v24 = vpop.permute.xlu1 %1259  ;;  %v2075_v49 = vld [vmem:[%s3346_s5 + $0x88] sm:$0xf0] }
 0x273   :  { %v1125_v44 = vmax.f32 %v1091_v40, 0.0  ;;  %v3134_v40 = vpop.permute.xlu0 %1349 }
 0x278   :  { %v1092_v22 = vpop.f32.mrf.mxu2 }
 0x279   :  { %v1093_v20 = vadd.f32 %v1092_v22, %v1004_v27  ;;  %v2105_v27 = vld [vmem:[%s3346_s5 + $0xc0] sm:$0xf]  ;;  %v2043_v22 = vld [vmem:[%s3346_s5 + $0x48] sm:$0xf0]  ;;  %v3160_v63 = vpop.permute.xlu1 %1324 }
 0x27a   :  { %v2106_v51 = vor.u32 %v2208_v57, %v2105_v27  ;;  %v2046_v4 = vor.u32 %v2191_v14, %v2043_v22 }
 0x27b   :  { %v1126_v36 = vmax.f32 %v1093_v20, 0.0  ;;  %v3145_v20 = vpop.permute.xlu2 %1329  ;;  %v3151_v53 = vpop.permute.xlu0 %1284 }
 0x27d   :  { %v1174_v10 = vpack.c.bf16 %v1126_v36, %v1125_v44 }
 0x27e   :  { %1565 = vmatmul.bf16.gmra.mxu3 %v2058_v5 }
 0x27f   :  { %1616 = vmatpush.bf16.msrb.mxu0 %v1174_v10  ;;  %v2193_v10 = vld [vmem:[%s3346_s5 + $0x54] sm:$0xf] }
 0x280   :  { %v2054_v18 = vor.u32 %v2193_v10, %v2051_v32 }
 0x281   :  { %v3177_v23 = vpop.permute.xlu1 %1309 }
 0x283   :  { %1617 = vmatpush.bf16.msrb.mxu0 %v1173_v37  ;;  %v3153_v44 = vpop.permute.xlu2 %1264  ;;  %v3171_v12 = vpop.permute.xlu0 %1269 }
 0x287   :  { %1618 = vmatpush.bf16.msrb.mxu0 %v1172_v59  ;;  %v2121_v59 = vld [vmem:[%s3346_s5 + $0xe0] sm:$0xf] }
 0x288   :  { %v2122_v61 = vor.u32 %v2212_v2, %v2121_v59 }
 0x28b   :  { %1619 = vmatpush.bf16.msrb.mxu0 %v1171_v43  ;;  %v3173_v55 = vpop.permute.xlu2 %1249  ;;  %v3179_v45 = vpop.permute.xlu0 %1334 }
 0x28e   :  { %1570 = vmatmul.bf16.gmra.mxu3 %v2066_v39 }
 0x28f   :  { %1620 = vmatpush.bf16.msrb.mxu0 %v3021_v19  ;;  %v2011_v19 = vld [vmem:[%s3346_s5 + $0x8] sm:$0xf0] }
 0x293   :  { %1621 = vmatpush.bf16.msrb.mxu0 %v3012_v0  ;;  %v2014_v0 = vor.u32 %v2183_v21, %v2011_v19  ;;  %v3193_v43 = vpop.permute.xlu2 %1314  ;;  %v3197_v21 = vpop.permute.xlu1 %1244 }
 0x294   :  { %v3199_v19 = vpop.permute.xlu0 %1319 }
 0x297   :  { %1622 = vmatpush.bf16.msrb.mxu0 %v3003_v8  ;;  %v2081_v8 = vld [vmem:[%s3346_s5 + $0x90] sm:$0xf] }
 0x298   :  { %v2082_v3 = vor.u32 %v2202_v58, %v2081_v8  ;;  %v2129_v58 = vld [vmem:[%s3346_s5 + $0xf0] sm:$0xf] }
 0x29b   :  { %1623 = vmatpush.bf16.msrb.mxu0 %v2991_v7  ;;  %v2022_v7 = vor.u32 %v2185_v30, %v2019_v62  ;;  %v1230_v8 = vpop.permute.xlu1 %1229  ;;  %v2214_v30 = vld [vmem:[%s3346_s5 + $0xf4] sm:$0xf0]  ;;  %v2197_v62 = vld [vmem:[%s3346_s5 + $0x74] sm:$0xf] }
 0x29c   :  { %v2130_v26 = vor.u32 %v2214_v30, %v2129_v58 }
 0x29e   :  { %1575 = vmatmul.bf16.gmra.mxu3 %v2074_v28  ;;  %1624 = vmatmul.bf16.vlgmr.msrb.gmra.mxu0 %v2014_v0  ;;  %v3201_v28 = vpop.permute.xlu2 %1299 }
 0x2a1   :  { %v3121_v46 = vpop.f32.mrf.mxu3 }
 0x2a6   :  { %v1235_v9 = vpop.permute.xlu2 %1234 }
 0x2a9   :  { %v3127_v42 = vpop.f32.mrf.mxu3 }
 0x2ae   :  { %1580 = vmatmul.bf16.gmra.mxu3 %v2082_v3  ;;  %1629 = vmatmul.bf16.gmra.mxu0 %v2022_v7  ;;  %v2067_v3 = vld [vmem:[%s3346_s5 + $0x78] sm:$0xf0]  ;;  %v3217_v7 = vpop.permute.xlu0 %1254  ;;  %v1220_v47 = vpop.permute.xlu2 %1219 }
 0x2af   :  { %v2070_v31 = vor.u32 %v2197_v62, %v2067_v3 }
 0x2b1   :  { %v3147_v5 = vpop.f32.mrf.mxu3 }
 0x2b2   :  { %v1542_v2 = vadd.f32 %v3147_v5, %v1220_v47  ;;  %v2091_v5 = vld [vmem:[%s3346_s5 + $0xa8] sm:$0xf0] }
 0x2b6   :  { %v1215_v22 = vpop.permute.xlu2 %1214 }
 0x2b9   :  { %v3155_v36 = vpop.f32.mrf.mxu3 }
 0x2be   :  { %1585 = vmatmul.bf16.gmra.mxu3 %v2090_v6  ;;  %1634 = vmatmul.bf16.gmra.mxu0 %v2030_v48  ;;  %v3219_v6 = vpop.permute.xlu1 %1294  ;;  %v1240_v48 = vpop.permute.xlu0 %1239 }
 0x2c1   :  { %v3175_v37 = vpop.f32.mrf.mxu3 }
 0x2c6   :  { %v1210_v56 = vpop.permute.xlu1 %1209  ;;  %v3228_v14 = vpop.permute.xlu0 %1304 }
 0x2c9   :  { %v3195_v39 = vpop.f32.mrf.mxu3 }
 0x2ce   :  { %1590 = vmatmul.bf16.gmra.mxu3 %v2098_v25  ;;  %1639 = vmatmul.bf16.gmra.mxu0 %v2038_v29  ;;  %v1537_v25 = vadd.f32 %v3121_v46, %v1210_v56  ;;  %v2078_v29 = vor.u32 %v2199_v16, %v2075_v49  ;;  %v3231_v32 = vpop.permute.xlu0 %1289  ;;  %v2083_v46 = vld [vmem:[%s3346_s5 + $0x98] sm:$0xf0]  ;;  %v1547_v16 = vadd.f32 %v3175_v37, %v1230_v8 }
 0x2cf   :  { %v2099_v37 = vld [vmem:[%s3346_s5 + $0xb8] sm:$0xf0] }
 0x2d1   :  { %v3203_v0 = vpop.f32.mrf.mxu3 }
 0x2d9   :  { %v1553_v60 = vpop.f32.mrf.mxu3 }
 0x2de   :  { %1595 = vmatmul.bf16.gmra.mxu3 %v2106_v51  ;;  %1644 = vmatmul.bf16.gmra.mxu0 %v2046_v4  ;;  %v1539_v51 = vadd.f32 %v3127_v42, %v1215_v22 }
 0x2e1   :  { %v1556_v59 = vpop.f32.mrf.mxu3 }
 0x2e9   :  { %v3243_v58 = vpop.f32.mrf.mxu3 }
 0x2ee   :  { %1600 = vmatmul.bf16.gmra.mxu3 %v2114_v13  ;;  %1649 = vmatmul.bf16.gmra.mxu0 %v2054_v18  ;;  %v2201_v13 = vld [vmem:[%s3346_s5 + $0x94] sm:$0xf] }
 0x2ef   :  { %v2086_v42 = vor.u32 %v2201_v13, %v2083_v46  ;;  %v1554_v46 = vadd.f32 %v1553_v60, %v3197_v21 }
 0x2fe   :  { %1605 = vmatmul.bf16.gmra.mxu3 %v2122_v61  ;;  %1654 = vmatmul.bf16.gmra.mxu0 %v2062_v15  ;;  %v1225_v61 = vpop.permute.xlu0 %1224 }
 0x2ff   :  { %v1544_v15 = vadd.f32 %v3155_v36, %v1225_v61  ;;  %v2207_v61 = vld [vmem:[%s3346_s5 + $0xc4] sm:$0xf] }
 0x30e   :  { %1610 = vmatmul.bf16.gmra.mxu3 %v2130_v26  ;;  %1659 = vmatmul.bf16.gmra.mxu0 %v2070_v31  ;;  %v2203_v31 = vld [vmem:[%s3346_s5 + $0xa4] sm:$0xf] }
 0x30f   :  { %v2094_v49 = vor.u32 %v2203_v31, %v2091_v5  ;;  %v2209_v31 = vld [vmem:[%s3346_s5 + $0xd4] sm:$0xf]  ;;  %v2115_v5 = vld [vmem:[%s3346_s5 + $0xd8] sm:$0xf0] }
 0x31b   :  { %v1625_v27 = vpop.f32.mrf.mxu0 }
 0x31c   :  { %v1626_v57 = vadd.f32 %v1625_v27, %v1537_v25  ;;  %v3254_v25 = vpop.f32.mrf.mxu3 }
 0x31e   :  { %1664 = vmatmul.bf16.gmra.mxu0 %v2078_v29  ;;  %v1705_v50 = vmax.f32 %v1626_v57, 0.0  ;;  %v1549_v29 = vadd.f32 %v3195_v39, %v1235_v9 }
 0x323   :  { %v1627_v4 = vpop.f32.mrf.mxu0 }
 0x324   :  { %v1628_v11 = vadd.f32 %v1627_v4, %v1539_v51  ;;  %v1563_v4 = vpop.f32.mrf.mxu3 }
 0x326   :  { %v1706_v10 = vmax.f32 %v1628_v11, 0.0  ;;  %v2205_v11 = vld [vmem:[%s3346_s5 + $0xb4] sm:$0xf] }
 0x328   :  { %v3239_v18 = vpack.c.bf16 %v1706_v10, %v1705_v50  ;;  %v1552_v50 = vadd.f32 %v3203_v0, %v1240_v48  ;;  %v2102_v10 = vor.u32 %v2205_v11, %v2099_v37  ;;  %v1557_v48 = vadd.f32 %v1556_v59, %v3173_v55  ;;  %v2211_v59 = vld [vmem:[%s3346_s5 + $0xe4] sm:$0xf]  ;;  %v2213_v11 = vld [vmem:[%s3346_s5 + $0xf4] sm:$0xf]  ;;  %v2131_v37 = vld [vmem:[%s3346_s5 + $0xf8] sm:$0xf0] }
 0x32b   :  { %v1630_v34 = vpop.f32.mrf.mxu0 }
 0x32c   :  { %v1631_v54 = vadd.f32 %v1630_v34, %v1542_v2  ;;  %v1566_v9 = vpop.f32.mrf.mxu3 }
 0x32e   :  { %1669 = vmatmul.bf16.gmra.mxu0 %v2086_v42  ;;  %v1707_v3 = vmax.f32 %v1631_v54, 0.0 }
 0x333   :  { %v1632_v30 = vpop.f32.mrf.mxu0 }
 0x334   :  { %v1633_v62 = vadd.f32 %v1632_v30, %v1544_v15  ;;  %v2107_v15 = vld [vmem:[%s3346_s5 + $0xc8] sm:$0xf0] }
 0x335   :  { %v2110_v30 = vor.u32 %v2207_v61, %v2107_v15 }
 0x336   :  { %v1708_v26 = vmax.f32 %v1633_v62, 0.0  ;;  %v1568_v62 = vpop.f32.mrf.mxu3 }
 0x338   :  { %v3251_v47 = vpack.c.bf16 %v1708_v26, %v1707_v3 }
 0x33b   :  { %v1635_v36 = vpop.f32.mrf.mxu0 }
 0x33c   :  { %v1636_v56 = vadd.f32 %v1635_v36, %v1547_v16  ;;  %v2118_v16 = vor.u32 %v2209_v31, %v2115_v5 }
 0x33e   :  { %1674 = vmatmul.bf16.gmra.mxu0 %v2094_v49  ;;  %v1709_v22 = vmax.f32 %v1636_v56, 0.0  ;;  %v1571_v26 = vpop.f32.mrf.mxu3  ;;  %v2123_v56 = vld [vmem:[%s3346_s5 + $0xe8] sm:$0xf0] }
 0x343   :  { %v1637_v27 = vpop.f32.mrf.mxu0 }
 0x344   :  { %v1638_v57 = vadd.f32 %v1637_v27, %v1549_v29  ;;  %v2126_v27 = vor.u32 %v2211_v59, %v2123_v56 }
 0x346   :  { %v1710_v51 = vmax.f32 %v1638_v57, 0.0  ;;  %v1573_v36 = vpop.f32.mrf.mxu3 }
 0x348   :  { %v3263_v8 = vpack.c.bf16 %v1710_v51, %v1709_v22 }
 0x34b   :  { %v1640_v13 = vpop.f32.mrf.mxu0 }
 0x34c   :  { %v1641_v39 = vadd.f32 %v1640_v13, %v1552_v50  ;;  %v2134_v50 = vor.u32 %v2213_v11, %v2131_v37 }
 0x34e   :  { %1679 = vmatmul.bf16.gmra.mxu0 %v2102_v10  ;;  %v1711_v34 = vmax.f32 %v1641_v39, 0.0  ;;  %v1576_v29 = vpop.f32.mrf.mxu3  ;;  %v1572_v39 = vadd.f32 %v1571_v26, %v3110_v1 }
 0x353   :  { %v1642_v2 = vpop.f32.mrf.mxu0 }
 0x354   :  { %v1643_v42 = vadd.f32 %v1642_v2, %v1554_v46  ;;  %v1569_v46 = vadd.f32 %v1568_v62, %v3129_v38  ;;  %v1574_v2 = vadd.f32 %v1573_v36, %v3151_v53  ;;  %v1559_v53 = vadd.f32 %v3243_v58, %v3217_v7 }
 0x355   :  { %v1577_v62 = vadd.f32 %v1576_v29, %v3231_v32 }
 0x356   :  { %v1712_v54 = vmax.f32 %v1643_v42, 0.0  ;;  %v1578_v22 = vpop.f32.mrf.mxu3 }
 0x358   :  { %v3273_v0 = vpack.c.bf16 %v1712_v54, %v1711_v34  ;;  %v1567_v54 = vadd.f32 %v1566_v9, %v3171_v12 }
 0x35b   :  { %v1645_v3 = vpop.f32.mrf.mxu0 }
 0x35c   :  { %v1646_v21 = vadd.f32 %v1645_v3, %v1557_v48  ;;  %v1564_v48 = vadd.f32 %v1563_v4, %v3153_v44 }
 0x35e   :  { %1684 = vmatmul.bf16.gmra.mxu0 %v2110_v30  ;;  %v1581_v13 = vpop.f32.mrf.mxu3 }
 0x363   :  { %v1647_v60 = vpop.f32.mrf.mxu0 }
 0x364   :  { %v1648_v44 = vadd.f32 %v1647_v60, %v1559_v53  ;;  %v1582_v60 = vadd.f32 %v1581_v13, %v3201_v28 }
 0x366   :  { %v1583_v5 = vpop.f32.mrf.mxu3 }
 0x36b   :  { %v1650_v49 = vpop.f32.mrf.mxu0 }
 0x36e   :  { %1689 = vmatmul.bf16.gmra.mxu0 %v2118_v16  ;;  %v1562_v16 = vadd.f32 %v3254_v25, %v3149_v24  ;;  %v1586_v25 = vpop.f32.mrf.mxu3 }
 0x370   :  { %v1651_v12 = vadd.f32 %v1650_v49, %v1562_v16 }
 0x373   :  { %v1652_v55 = vpop.f32.mrf.mxu0 }
 0x374   :  { %v1653_v1 = vadd.f32 %v1652_v55, %v1564_v48  ;;  %v1579_v55 = vadd.f32 %v1578_v22, %v3219_v6  ;;  %v3313_v6 = vld [vmem:[%s3347_s7] sm:$0xff]  ;;  %v1584_v22 = vadd.f32 %v1583_v5, %v3228_v14 }
 0x376   :  { %v1716_v4 = vmax.f32 %v1653_v1, 0.0  ;;  %v1588_v37 = vpop.f32.mrf.mxu3 }
 0x377   :  { %v1589_v14 = vadd.f32 %v1588_v37, %v3193_v43 }
 0x37b   :  { %v1655_v57 = vpop.f32.mrf.mxu0 }
 0x37c   :  { %v1656_v30 = vadd.f32 %v1655_v57, %v1567_v54  ;;  %v1714_v57 = vmax.f32 %v1648_v44, 0.0 }
 0x37e   :  { %1694 = vmatmul.bf16.gmra.mxu0 %v2126_v27  ;;  %v1717_v9 = vmax.f32 %v1656_v30, 0.0  ;;  %v1715_v27 = vmax.f32 %v1651_v12, 0.0  ;;  %v1591_v13 = vpop.f32.mrf.mxu3 }
 0x37f   :  { %v1592_v5 = vadd.f32 %v1591_v13, %v3199_v19 }
 0x380   :  { %v1743_v24 = vpack.c.bf16 %v1716_v4, %v1715_v27 }
 0x383   :  { %v1657_v51 = vpop.f32.mrf.mxu0 }
 0x384   :  { %v1658_v61 = vadd.f32 %v1657_v51, %v1569_v46  ;;  %v1713_v51 = vmax.f32 %v1646_v21, 0.0  ;;  %v1761_v21 = vunpack.c.l.b16 %v3313_v6 }
 0x386   :  { %v1718_v26 = vmax.f32 %v1658_v61, 0.0  ;;  %v1742_v58 = vpack.c.bf16 %v1714_v57, %v1713_v51  ;;  %v1593_v61 = vpop.f32.mrf.mxu3 }
 0x387   :  { %v1594_v1 = vadd.f32 %v1593_v61, %v3160_v63 }
 0x388   :  { %v1744_v59 = vpack.c.bf16 %v1718_v26, %v1717_v9 }
 0x38b   :  { %v1660_v10 = vpop.f32.mrf.mxu0 }
 0x38c   :  { %v1661_v42 = vadd.f32 %v1660_v10, %v1572_v39 }
 0x38e   :  { %1699 = vmatmul.bf16.gmra.mxu0 %v2134_v50  ;;  %v1719_v3 = vmax.f32 %v1661_v42, 0.0  ;;  %v1587_v42 = vadd.f32 %v1586_v25, %v3177_v23 }
 0x393   :  { %v1662_v34 = vpop.f32.mrf.mxu0 }
 0x394   :  { %v1663_v15 = vadd.f32 %v1662_v34, %v1574_v2 }
 0x396   :  { %v1720_v31 = vmax.f32 %v1663_v15, 0.0 }
 0x398   :  { %v1745_v38 = vpack.c.bf16 %v1720_v31, %v1719_v3  ;;  %v1596_v31 = vpop.f32.mrf.mxu3 }
 0x399   :  { %v1597_v43 = vadd.f32 %v1596_v31, %v3145_v20 }
 0x39a   :  { %1767 = vmatpush.bf16.msra.mxu1 %v1745_v38 }
 0x39b   :  { %v1665_v36 = vpop.f32.mrf.mxu0 }
 0x39c   :  { %v1666_v56 = vadd.f32 %v1665_v36, %v1577_v62 }
 0x39e   :  { %1768 = vmatpush.bf16.msra.mxu1 %v1744_v59  ;;  %v1721_v49 = vmax.f32 %v1666_v56, 0.0 }
 0x3a0   :  { %v1598_v26 = vpop.f32.mrf.mxu3 }
 0x3a2   :  { %1769 = vmatpush.bf16.msra.mxu1 %v1743_v24 }
 0x3a3   :  { %v1667_v7 = vpop.f32.mrf.mxu0 }
 0x3a4   :  { %v1668_v32 = vadd.f32 %v1667_v7, %v1579_v55 }
 0x3a6   :  { %v1722_v29 = vmax.f32 %v1668_v32, 0.0  ;;  %1770 = vmatpush.bf16.msra.mxu1 %v1742_v58 }
 0x3a8   :  { %v3305_v11 = vpack.c.bf16 %v1722_v29, %v1721_v49  ;;  %v1601_v44 = vpop.f32.mrf.mxu3 }
 0x3aa   :  { %1771 = vmatpush.bf16.msra.mxu1 %v3273_v0  ;;  %v1763_v0 = vpack.c.b16 %v1761_v21, %v1761_v21 }
 0x3ab   :  { %v1670_v50 = vpop.f32.mrf.mxu0 }
 0x3ac   :  { %v1671_v10 = vadd.f32 %v1670_v50, %v1582_v60 }
 0x3ae   :  { %1772 = vmatpush.bf16.msra.mxu1 %v3263_v8  ;;  %v1723_v46 = vmax.f32 %v1671_v10, 0.0 }
 0x3b0   :  { %v1603_v59 = vpop.f32.mrf.mxu3 }
 0x3b1   :  { %v1604_v50 = vadd.f32 %v1603_v59, %v3125_v41 }
 0x3b2   :  { %1773 = vmatpush.bf16.msra.mxu1 %v3251_v47 }
 0x3b3   :  { %v1672_v39 = vpop.f32.mrf.mxu0 }
 0x3b4   :  { %v1673_v28 = vadd.f32 %v1672_v39, %v1584_v22  ;;  %v1602_v39 = vadd.f32 %v1601_v44, %v3123_v35  ;;  %v1762_v35 = vunpack.c.h.b16 %v3313_v6 }
 0x3b6   :  { %v1724_v2 = vmax.f32 %v1673_v28, 0.0  ;;  %1774 = vmatpush.bf16.msra.mxu1 %v3239_v18 }
 0x3b8   :  { %v3319_v8 = vpack.c.bf16 %v1724_v2, %v1723_v46  ;;  %v1606_v27 = vpop.f32.mrf.mxu3 }
 0x3b9   :  { %1775 = vmatmul.bf16.vlgmr.msra.gmra.mxu1 %v1763_v0  ;;  %v1607_v29 = vadd.f32 %v1606_v27, %v3134_v40 }
 0x3bb   :  { %v1675_v34 = vpop.f32.mrf.mxu0 }
 0x3bc   :  { %v1676_v54 = vadd.f32 %v1675_v34, %v1587_v42 }
 0x3be   :  { %v1725_v48 = vmax.f32 %v1676_v54, 0.0 }
 0x3c0   :  { %v1608_v57 = vpop.f32.mrf.mxu3 }
 0x3c1   :  { %v1609_v58 = vadd.f32 %v1608_v57, %v3105_v52  ;;  %v1599_v52 = vadd.f32 %v1598_v26, %v3179_v45  ;;  %v1764_v45 = vpack.c.b16 %v1762_v35, %v1762_v35 }
 0x3c3   :  { %v1677_v15 = vpop.f32.mrf.mxu0 }
 0x3c4   :  { %v1678_v47 = vadd.f32 %v1677_v15, %v1589_v14 }
 0x3c6   :  { %v1726_v30 = vmax.f32 %v1678_v47, 0.0  ;;  %v1758_v47 = vpop.permute.xlu0 %1757 }
 0x3c8   :  { %v1748_v3 = vpack.c.bf16 %v1726_v30, %v1725_v48  ;;  %v1611_v63 = vpop.f32.mrf.mxu3 }
 0x3c9   :  { %v1612_v7 = vadd.f32 %v1611_v63, %v3089_v33 }
 0x3cb   :  { %v1680_v16 = vpop.f32.mrf.mxu0 }
 0x3cc   :  { %v1681_v18 = vadd.f32 %v1680_v16, %v1592_v5 }
 0x3ce   :  { %v1727_v53 = vmax.f32 %v1681_v18, 0.0 }
 0x3d0   :  { %v1613_v51 = vpop.f32.mrf.mxu3 }
 0x3d1   :  { %v1614_v20 = vadd.f32 %v1613_v51, %v3103_v17 }
 0x3d3   :  { %v1682_v38 = vpop.f32.mrf.mxu0 }
 0x3d4   :  { %v1683_v23 = vadd.f32 %v1682_v38, %v1594_v1 }
 0x3d6   :  { %v1728_v62 = vmax.f32 %v1683_v23, 0.0 }
 0x3d8   :  { %v1749_v12 = vpack.c.bf16 %v1728_v62, %v1727_v53 }
 0x3db   :  { %v1685_v9 = vpop.f32.mrf.mxu0 }
 0x3dc   :  { %v1686_v36 = vadd.f32 %v1685_v9, %v1597_v43 }
 0x3de   :  { %v1729_v54 = vmax.f32 %v1686_v36, 0.0 }
 0x3e3   :  { %v1687_v4 = vpop.f32.mrf.mxu0 }
 0x3e4   :  { %v1688_v46 = vadd.f32 %v1687_v4, %v1599_v52 }
 0x3e6   :  { %v1730_v34 = vmax.f32 %v1688_v46, 0.0 }
 0x3e8   :  { %v1750_v61 = vpack.c.bf16 %v1730_v34, %v1729_v54 }
 0x3eb   :  { %v1690_v56 = vpop.f32.mrf.mxu0 }
 0x3ec   :  { %v1691_v0 = vadd.f32 %v1690_v56, %v1602_v39 }
 0x3ee   :  { %v1731_v42 = vmax.f32 %v1691_v0, 0.0 }
 0x3f3   :  { %v1692_v19 = vpop.f32.mrf.mxu0 }
 0x3f4   :  { %v1693_v28 = vadd.f32 %v1692_v19, %v1604_v50 }
 0x3f6   :  { %v1732_v2 = vmax.f32 %v1693_v28, 0.0 }
 0x3f8   :  { %v1751_v41 = vpack.c.bf16 %v1732_v2, %v1731_v42 }
 0x3fb   :  { %v1695_v24 = vpop.f32.mrf.mxu0 }
 0x3fc   :  { %v1696_v10 = vadd.f32 %v1695_v24, %v1607_v29 }
 0x3fe   :  { %v1733_v17 = vmax.f32 %v1696_v10, 0.0 }
 0x403   :  { %v1697_v25 = vpop.f32.mrf.mxu0 }
 0x404   :  { %v1698_v60 = vadd.f32 %v1697_v25, %v1609_v58 }
 0x406   :  { %v1734_v13 = vmax.f32 %v1698_v60, 0.0 }
 0x408   :  { %v1752_v40 = vpack.c.bf16 %v1734_v13, %v1733_v17 }
 0x40b   :  { %v1700_v55 = vpop.f32.mrf.mxu0 }
 0x40c   :  { %v1701_v32 = vadd.f32 %v1700_v55, %v1612_v7 }
 0x40e   :  { %v1735_v21 = vmax.f32 %v1701_v32, 0.0 }
 0x413   :  { %v1702_v49 = vpop.f32.mrf.mxu0 }
 0x414   :  { %v1703_v37 = vadd.f32 %v1702_v49, %v1614_v20 }
 0x416   :  { %v1736_v22 = vmax.f32 %v1703_v37, 0.0 }
 0x418   :  { %v1753_v33 = vpack.c.bf16 %v1736_v22, %v1735_v21 }
 0x41a   :  { %1780 = vmatpush.bf16.msra.mxu2 %v1753_v33 }
 0x41e   :  { %1781 = vmatpush.bf16.msra.mxu2 %v1752_v40 }
 0x422   :  { %1782 = vmatpush.bf16.msra.mxu2 %v1751_v41 }
 0x426   :  { %1783 = vmatpush.bf16.msra.mxu2 %v1750_v61 }
 0x42a   :  { %1784 = vmatpush.bf16.msra.mxu2 %v1749_v12 }
 0x42e   :  { %1785 = vmatpush.bf16.msra.mxu2 %v1748_v3 }
 0x432   :  { %1786 = vmatpush.bf16.msra.mxu2 %v3319_v8 }
 0x436   :  { %v1776_v14 = vpop.f32.mrf.mxu1  ;;  %1787 = vmatpush.bf16.msra.mxu2 %v3305_v11 }
 0x437   :  { %v1777_v48 = vadd.f32 %v1776_v14, %v1758_v47 }
 0x439   :  { %1788 = vmatmul.bf16.vlgmr.msra.gmra.mxu2 %v1764_v45 }
 0x43e   :  { %v1778_v15 = vpop.f32.mrf.mxu1 }
 0x4bc   :  { %v1789_v30 = vpop.f32.mrf.mxu2 }
 0x4bd   :  { %v1790_v31 = vadd.f32 %v1789_v30, %v1777_v48 }
 0x4bf   :  { %1794 = vst.msk [vmem:[%s3348_s9] sm:$0xff] %vm1793_vm3, %v1790_v31 }
 0x4c4   :  { %v1791_v3 = vpop.f32.mrf.mxu2 }

</bundles_post_ra>
